<compile_context>
chip_gen: v5e
topology: v5e:2x2
jax: 0.10.0
libtpu: 0.0.40
codegen_flags: <defaults>
</compile_context>

<pallas_src>
import functools

import jax
import jax.numpy as jnp
from jax.experimental import pallas as pl
from jax.experimental.pallas import tpu as pltpu


def _bilstm_encoder_kernel(
    x_fwd_ref, x_bwd_ref, lens_ref,
    wih_f_ref, whh_f_ref, b_f_ref,
    wih_b_ref, whh_b_ref, b_b_ref,
    w_rh_ref, b_rh_ref, w_rc_ref, b_rc_ref,
    out_f_ref, out_b_ref, hcat_ref, ccat_ref, newh_ref, newc_ref,
    h_f, c_f, h_b, c_b,
    *, hidden_size):
    """One grid step = one time index for BOTH directions over the full batch."""
    H = hidden_size
    s = pl.program_id(0)
    T = pl.num_programs(0)

    @pl.when(s == 0)
    def _init():
        h_f[...] = jnp.zeros_like(h_f)
        c_f[...] = jnp.zeros_like(c_f)
        h_b[...] = jnp.zeros_like(h_b)
        c_b[...] = jnp.zeros_like(c_b)

    lens = lens_ref[...]                       # (B, 1) int32

    def cell(x, h, c, wih_ref, whh_ref, b_ref):
        # gates layout (PyTorch order): [i | f | g | o] along the lane axis.
        gates = (jnp.dot(x, wih_ref[...], preferred_element_type=jnp.float32)
                 + jnp.dot(h, whh_ref[...], preferred_element_type=jnp.float32)
                 + b_ref[...])
        i = jax.nn.sigmoid(gates[:, 0:H])
        f = jax.nn.sigmoid(gates[:, H:2 * H])
        g = jnp.tanh(gates[:, 2 * H:3 * H])
        o = jax.nn.sigmoid(gates[:, 3 * H:4 * H])
        c_new = f * c + i * g
        h_new = o * jnp.tanh(c_new)
        return h_new, c_new

    # ---------------- forward direction: time t = s ----------------
    t_f = s
    h_prev, c_prev = h_f[...], c_f[...]
    h_new, c_new = cell(x_fwd_ref[0].astype(jnp.float32), h_prev, c_prev,
                        wih_f_ref, whh_f_ref, b_f_ref)
    valid_f = t_f < lens                       # (B, 1) bool
    h_f[...] = jnp.where(valid_f, h_new, h_prev)   # freeze after last valid step
    c_f[...] = jnp.where(valid_f, c_new, c_prev)
    out_f_ref[0] = jnp.where(valid_f, h_new, 0.0).astype(out_f_ref.dtype)

    # ---------------- reverse direction: time t = T-1-s ----------------
    t_b = T - 1 - s
    hb_prev, cb_prev = h_b[...], c_b[...]
    hb_new, cb_new = cell(x_bwd_ref[0].astype(jnp.float32), hb_prev, cb_prev,
                          wih_b_ref, whh_b_ref, b_b_ref)
    valid_b = t_b < lens
    h_b[...] = jnp.where(valid_b, hb_new, hb_prev)  # stays 0 until t < L_b
    c_b[...] = jnp.where(valid_b, cb_new, cb_prev)
    out_b_ref[0] = jnp.where(valid_b, hb_new, 0.0).astype(out_b_ref.dtype)

    # ---------------- finalize: concat states + reduce_h/reduce_c ----------------
    @pl.when(s == T - 1)
    def _finalize():
        h_cat = jnp.concatenate([h_f[...], h_b[...]], axis=-1)   # (B, 2H)
        c_cat = jnp.concatenate([c_f[...], c_b[...]], axis=-1)
        hcat_ref[...] = h_cat.astype(hcat_ref.dtype)
        ccat_ref[...] = c_cat.astype(ccat_ref.dtype)
        newh_ref[...] = (jnp.dot(h_cat, w_rh_ref[...],
                                 preferred_element_type=jnp.float32)
                         + b_rh_ref[...]).astype(newh_ref.dtype)
        newc_ref[...] = (jnp.dot(c_cat, w_rc_ref[...],
                                 preferred_element_type=jnp.float32)
                         + b_rc_ref[...]).astype(newc_ref.dtype)


def rnn_encoder_forward(embedded_words, input_lens, params):
    """Equivalent of RNNEncoder.forward (bidirect=True).

    embedded_words: float [B, T, I] (batch_first, padded)
    input_lens:     int   [B], sorted descending, input_lens[0] == T
    returns: (output [T, B, 2H], context_mask [B, T], (new_h, new_c),
              (h_cat, c_cat))   -- matching (output, context_mask, h_t, bi_ht)
    """
    B, T, I = embedded_words.shape
    H = params["w_hh_f"].shape[1]

    x_tbi = jnp.transpose(embedded_words.astype(jnp.float32), (1, 0, 2))  # (T,B,I)
    lens2d = input_lens.astype(jnp.int32).reshape(B, 1)

    # PyTorch weights are [4H, in]; pass transposed so matmul is x @ W.
    wih_f = params["w_ih_f"].T.astype(jnp.float32)                 # (I, 4H)
    whh_f = params["w_hh_f"].T.astype(jnp.float32)                 # (H, 4H)
    b_f = (params["b_ih_f"] + params["b_hh_f"]).reshape(1, 4 * H).astype(jnp.float32)
    wih_b = params["w_ih_b"].T.astype(jnp.float32)
    whh_b = params["w_hh_b"].T.astype(jnp.float32)
    b_b = (params["b_ih_b"] + params["b_hh_b"]).reshape(1, 4 * H).astype(jnp.float32)
    w_rh = params["w_rh"].T.astype(jnp.float32)                    # (2H, H)
    b_rh = params["b_rh"].reshape(1, H).astype(jnp.float32)
    w_rc = params["w_rc"].T.astype(jnp.float32)
    b_rc = params["b_rc"].reshape(1, H).astype(jnp.float32)

    def resident(shape):
        n = len(shape)
        return pl.BlockSpec(shape, lambda s, n=n: (0,) * n)   # loaded once, VMEM-resident

    kernel = functools.partial(_bilstm_encoder_kernel, hidden_size=H)

    out_shapes = (
        jax.ShapeDtypeStruct((T, B, H), jnp.float32),   # forward half of output
        jax.ShapeDtypeStruct((T, B, H), jnp.float32),   # backward half of output
        jax.ShapeDtypeStruct((B, 2 * H), jnp.float32),  # h_  (bi_ht[0])
        jax.ShapeDtypeStruct((B, 2 * H), jnp.float32),  # c_  (bi_ht[1])
        jax.ShapeDtypeStruct((B, H), jnp.float32),      # new_h
        jax.ShapeDtypeStruct((B, H), jnp.float32),      # new_c
    )

    grid_spec = pltpu.PrefetchScalarGridSpec(
        num_scalar_prefetch=0,
        grid=(T,),
        in_specs=[
            pl.BlockSpec((1, B, I), lambda s: (s, 0, 0)),          # x[t] forward
            pl.BlockSpec((1, B, I), lambda s: (T - 1 - s, 0, 0)),  # x[T-1-t] reverse
            resident((B, 1)),
            resident((I, 4 * H)), resident((H, 4 * H)), resident((1, 4 * H)),
            resident((I, 4 * H)), resident((H, 4 * H)), resident((1, 4 * H)),
            resident((2 * H, H)), resident((1, H)),
            resident((2 * H, H)), resident((1, H)),
        ],
        out_specs=[
            pl.BlockSpec((1, B, H), lambda s: (s, 0, 0)),
            pl.BlockSpec((1, B, H), lambda s: (T - 1 - s, 0, 0)),
            resident((B, 2 * H)), resident((B, 2 * H)),
            resident((B, H)), resident((B, H)),
        ],
        scratch_shapes=[pltpu.VMEM((B, H), jnp.float32)] * 4,   # h_f, c_f, h_b, c_b
    )

    out_f, out_b, h_cat, c_cat, new_h, new_c = pl.pallas_call(
        kernel,
        out_shape=out_shapes,
        grid_spec=grid_spec,
        compiler_params=pltpu.CompilerParams(
            dimension_semantics=("arbitrary",)),   # true recurrence: sequential
    )(x_tbi, x_tbi, lens2d, wih_f, whh_f, b_f, wih_b, whh_b, b_b,
      w_rh, b_rh, w_rc, b_rc)

    # pad_packed_sequence default is time-major: (T, B, 2H), [forward | backward].
    output = jnp.concatenate([out_f, out_b], axis=-1)
    # max_length = input_lens[0] == T (pack_padded_sequence requires sorted lens).
    context_mask = (jnp.arange(T)[None, :] < input_lens[:, None]).astype(jnp.int32)
    h_t = (new_h, new_c)
    bi_ht = (h_cat, c_cat)
    return output, context_mask, h_t, bi_ht


def rnn_encoder_reference(embedded_words, input_lens, params):
    """Pure-JAX reference (packed bidirectional LSTM semantics)."""
    B, T, I = embedded_words.shape
    H = params["w_hh_f"].shape[1]
    hp = jax.lax.Precision.HIGHEST

    def cell(x, h, c, wih, whh, b):
        gates = (jnp.dot(x, wih.T, precision=hp)
                 + jnp.dot(h, whh.T, precision=hp) + b)
        i = jax.nn.sigmoid(gates[:, 0:H])
        f = jax.nn.sigmoid(gates[:, H:2 * H])
        g = jnp.tanh(gates[:, 2 * H:3 * H])
        o = jax.nn.sigmoid(gates[:, 3 * H:4 * H])
        c_new = f * c + i * g
        return o * jnp.tanh(c_new), c_new

    b_f = params["b_ih_f"] + params["b_hh_f"]
    b_b = params["b_ih_b"] + params["b_hh_b"]
    lens = input_lens.astype(jnp.int32)

    h_f = jnp.zeros((B, H), jnp.float32)
    c_f = jnp.zeros((B, H), jnp.float32)
    out_f = [None] * T
    for t in range(T):
        hn, cn = cell(embedded_words[:, t], h_f, c_f,
                      params["w_ih_f"], params["w_hh_f"], b_f)
        m = (t < lens)[:, None]
        out_f[t] = jnp.where(m, hn, 0.0)
        h_f = jnp.where(m, hn, h_f)
        c_f = jnp.where(m, cn, c_f)

    h_b = jnp.zeros((B, H), jnp.float32)
    c_b = jnp.zeros((B, H), jnp.float32)
    out_b = [None] * T
    for t in range(T - 1, -1, -1):
        hn, cn = cell(embedded_words[:, t], h_b, c_b,
                      params["w_ih_b"], params["w_hh_b"], b_b)
        m = (t < lens)[:, None]
        out_b[t] = jnp.where(m, hn, 0.0)
        h_b = jnp.where(m, hn, h_b)
        c_b = jnp.where(m, cn, c_b)

    output = jnp.stack(
        [jnp.concatenate([out_f[t], out_b[t]], axis=-1) for t in range(T)], axis=0)
    h_cat = jnp.concatenate([h_f, h_b], axis=-1)
    c_cat = jnp.concatenate([c_f, c_b], axis=-1)
    new_h = jnp.dot(h_cat, params["w_rh"].T, precision=hp) + params["b_rh"]
    new_c = jnp.dot(c_cat, params["w_rc"].T, precision=hp) + params["b_rc"]
    context_mask = (jnp.arange(T)[None, :] < lens[:, None]).astype(jnp.int32)
    return output, context_mask, (new_h, new_c), (h_cat, c_cat)


if __name__ == "__main__":
    # RNNEncoder(input_size=I, hidden_size=H, dropout=0.2, bidirect=True)
    B, T, I, H = 2, 8, 32, 64

    key = jax.random.PRNGKey(0)
    ks = jax.random.split(key, 10)

    def xavier(k, shape):                       # nn.init.xavier_uniform_, gain=1
        fan_out, fan_in = shape
        bound = (6.0 / (fan_in + fan_out)) ** 0.5
        return jax.random.uniform(k, shape, jnp.float32, -bound, bound)

    def linear_init(kw, kb, out_dim, in_dim):   # nn.Linear default init
        bound = 1.0 / (in_dim ** 0.5)
        w = jax.random.uniform(kw, (out_dim, in_dim), jnp.float32, -bound, bound)
        b = jax.random.uniform(kb, (out_dim,), jnp.float32, -bound, bound)
        return w, b

    w_rh, b_rh = linear_init(ks[4], ks[5], H, 2 * H)
    w_rc, b_rc = linear_init(ks[6], ks[7], H, 2 * H)

    params = {
        "w_ih_f": xavier(ks[0], (4 * H, I)),
        "w_hh_f": xavier(ks[1], (4 * H, H)),
        "b_ih_f": jnp.zeros((4 * H,), jnp.float32),   # init_weight: biases = 0
        "b_hh_f": jnp.zeros((4 * H,), jnp.float32),
        "w_ih_b": xavier(ks[2], (4 * H, I)),
        "w_hh_b": xavier(ks[3], (4 * H, H)),
        "b_ih_b": jnp.zeros((4 * H,), jnp.float32),
        "b_hh_b": jnp.zeros((4 * H,), jnp.float32),
        "w_rh": w_rh, "b_rh": b_rh,
        "w_rc": w_rc, "b_rc": b_rc,
    }

    embedded_words = jax.random.normal(ks[8], (B, T, I), jnp.float32)
    # lengths sorted descending, longest == T (pack_padded_sequence contract)
    input_lens = jnp.array([T, 5], dtype=jnp.int32)

    out, mask, (new_h, new_c), (h_cat, c_cat) = jax.block_until_ready(
        rnn_encoder_forward(embedded_words, input_lens, params))

    r_out, r_mask, (r_new_h, r_new_c), (r_h_cat, r_c_cat) = (
        rnn_encoder_reference(embedded_words, input_lens, params))

    assert out.shape == (T, B, 2 * H)
    assert mask.shape == (B, T)
    assert jnp.array_equal(mask, r_mask)
    tol = dict(atol=2e-3, rtol=2e-3)
    assert jnp.allclose(out, r_out, **tol), float(jnp.max(jnp.abs(out - r_out)))
    assert jnp.allclose(h_cat, r_h_cat, **tol)
    assert jnp.allclose(c_cat, r_c_cat, **tol)
    assert jnp.allclose(new_h, r_new_h, **tol)
    assert jnp.allclose(new_c, r_new_c, **tol)

    print("KERNEL_OK")
</pallas_src>

<mosaic_0001>
module attributes {stable_mosaic.version = 11 : i64} {
  func.func @_bilstm_encoder_kernel(%arg0: i32, %arg1: memref<1x2x32xf32, #tpu.memory_space<vmem>>, %arg2: memref<1x2x32xf32, #tpu.memory_space<vmem>>, %arg3: memref<2x1xi32, #tpu.memory_space<vmem>>, %arg4: memref<32x256xf32, #tpu.memory_space<vmem>>, %arg5: memref<64x256xf32, #tpu.memory_space<vmem>>, %arg6: memref<1x256xf32, #tpu.memory_space<vmem>>, %arg7: memref<32x256xf32, #tpu.memory_space<vmem>>, %arg8: memref<64x256xf32, #tpu.memory_space<vmem>>, %arg9: memref<1x256xf32, #tpu.memory_space<vmem>>, %arg10: memref<128x64xf32, #tpu.memory_space<vmem>>, %arg11: memref<1x64xf32, #tpu.memory_space<vmem>>, %arg12: memref<128x64xf32, #tpu.memory_space<vmem>>, %arg13: memref<1x64xf32, #tpu.memory_space<vmem>>, %arg14: memref<1x2x64xf32, #tpu.memory_space<vmem>>, %arg15: memref<1x2x64xf32, #tpu.memory_space<vmem>>, %arg16: memref<2x128xf32, #tpu.memory_space<vmem>>, %arg17: memref<2x128xf32, #tpu.memory_space<vmem>>, %arg18: memref<2x64xf32, #tpu.memory_space<vmem>>, %arg19: memref<2x64xf32, #tpu.memory_space<vmem>>, %arg20: memref<2x64xf32, #tpu.memory_space<vmem>>, %arg21: memref<2x64xf32, #tpu.memory_space<vmem>>, %arg22: memref<2x64xf32, #tpu.memory_space<vmem>>, %arg23: memref<2x64xf32, #tpu.memory_space<vmem>>) attributes {dimension_semantics = [#tpu.dimension_semantics<arbitrary>], iteration_bounds = array<i64: 8>, scalar_prefetch = 0 : i64, scratch_operands = 4 : i64, tpu.core_type = #tpu.core_type<tc>, window_params = [{transform_indices = @transform_0, window_bounds = array<i64: 1, 2, 32>}, {transform_indices = @transform_1, window_bounds = array<i64: 1, 2, 32>}, {pipeline_mode = #tpu.pipeline_mode<synchronous>, transform_indices = @transform_2, window_bounds = array<i64: 2, 1>}, {pipeline_mode = #tpu.pipeline_mode<synchronous>, transform_indices = @transform_3, window_bounds = array<i64: 32, 256>}, {pipeline_mode = #tpu.pipeline_mode<synchronous>, transform_indices = @transform_4, window_bounds = array<i64: 64, 256>}, {pipeline_mode = #tpu.pipeline_mode<synchronous>, transform_indices = @transform_5, window_bounds = array<i64: 1, 256>}, {pipeline_mode = #tpu.pipeline_mode<synchronous>, transform_indices = @transform_6, window_bounds = array<i64: 32, 256>}, {pipeline_mode = #tpu.pipeline_mode<synchronous>, transform_indices = @transform_7, window_bounds = array<i64: 64, 256>}, {pipeline_mode = #tpu.pipeline_mode<synchronous>, transform_indices = @transform_8, window_bounds = array<i64: 1, 256>}, {pipeline_mode = #tpu.pipeline_mode<synchronous>, transform_indices = @transform_9, window_bounds = array<i64: 128, 64>}, {pipeline_mode = #tpu.pipeline_mode<synchronous>, transform_indices = @transform_10, window_bounds = array<i64: 1, 64>}, {pipeline_mode = #tpu.pipeline_mode<synchronous>, transform_indices = @transform_11, window_bounds = array<i64: 128, 64>}, {pipeline_mode = #tpu.pipeline_mode<synchronous>, transform_indices = @transform_12, window_bounds = array<i64: 1, 64>}, {transform_indices = @transform_13, window_bounds = array<i64: 1, 2, 64>}, {transform_indices = @transform_14, window_bounds = array<i64: 1, 2, 64>}, {pipeline_mode = #tpu.pipeline_mode<synchronous>, transform_indices = @transform_15, window_bounds = array<i64: 2, 128>}, {pipeline_mode = #tpu.pipeline_mode<synchronous>, transform_indices = @transform_16, window_bounds = array<i64: 2, 128>}, {pipeline_mode = #tpu.pipeline_mode<synchronous>, transform_indices = @transform_17, window_bounds = array<i64: 2, 64>}, {pipeline_mode = #tpu.pipeline_mode<synchronous>, transform_indices = @transform_18, window_bounds = array<i64: 2, 64>}]} {
    %c0_i32 = arith.constant 0 : i32
    %0 = arith.cmpi eq, %arg0, %c0_i32 : i32
    %1 = arith.extui %0 : i1 to i32
    %c0_i32_0 = arith.constant 0 : i32
    %2 = arith.cmpi ne, %1, %c0_i32_0 : i32
    scf.if %2 {
      %cst_55 = arith.constant 0.000000e+00 : f32
      %116 = vector.broadcast %cst_55 : f32 to vector<2x64xf32>
      %c0_56 = arith.constant 0 : index
      %c0_57 = arith.constant 0 : index
      %117 = vector.load %arg20[%c0_56, %c0_57] : memref<2x64xf32, #tpu.memory_space<vmem>>, vector<2x64xf32>
      tpu.vector_store %arg20[%c0_56, %c0_57], %116 {strides = array<i32>} : memref<2x64xf32, #tpu.memory_space<vmem>>, vector<2x64xf32>,
      %cst_58 = arith.constant 0.000000e+00 : f32
      %118 = vector.broadcast %cst_58 : f32 to vector<2x64xf32>
      %c0_59 = arith.constant 0 : index
      %c0_60 = arith.constant 0 : index
      %119 = vector.load %arg21[%c0_59, %c0_60] : memref<2x64xf32, #tpu.memory_space<vmem>>, vector<2x64xf32>
      tpu.vector_store %arg21[%c0_59, %c0_60], %118 {strides = array<i32>} : memref<2x64xf32, #tpu.memory_space<vmem>>, vector<2x64xf32>,
      %cst_61 = arith.constant 0.000000e+00 : f32
      %120 = vector.broadcast %cst_61 : f32 to vector<2x64xf32>
      %c0_62 = arith.constant 0 : index
      %c0_63 = arith.constant 0 : index
      %121 = vector.load %arg22[%c0_62, %c0_63] : memref<2x64xf32, #tpu.memory_space<vmem>>, vector<2x64xf32>
      tpu.vector_store %arg22[%c0_62, %c0_63], %120 {strides = array<i32>} : memref<2x64xf32, #tpu.memory_space<vmem>>, vector<2x64xf32>,
      %cst_64 = arith.constant 0.000000e+00 : f32
      %122 = vector.broadcast %cst_64 : f32 to vector<2x64xf32>
      %c0_65 = arith.constant 0 : index
      %c0_66 = arith.constant 0 : index
      %123 = vector.load %arg23[%c0_65, %c0_66] : memref<2x64xf32, #tpu.memory_space<vmem>>, vector<2x64xf32>
      tpu.vector_store %arg23[%c0_65, %c0_66], %122 {strides = array<i32>} : memref<2x64xf32, #tpu.memory_space<vmem>>, vector<2x64xf32>,
    } else {
    }
    %c0 = arith.constant 0 : index
    %c0_1 = arith.constant 0 : index
    %3 = vector.load %arg3[%c0, %c0_1] : memref<2x1xi32, #tpu.memory_space<vmem>>, vector<2x1xi32>
    %c0_2 = arith.constant 0 : index
    %c0_3 = arith.constant 0 : index
    %4 = vector.load %arg20[%c0_2, %c0_3] : memref<2x64xf32, #tpu.memory_space<vmem>>, vector<2x64xf32>
    %c0_4 = arith.constant 0 : index
    %c0_5 = arith.constant 0 : index
    %5 = vector.load %arg21[%c0_4, %c0_5] : memref<2x64xf32, #tpu.memory_space<vmem>>, vector<2x64xf32>
    %c0_6 = arith.constant 0 : index
    %c0_7 = arith.constant 0 : index
    %c0_8 = arith.constant 0 : index
    %6 = vector.load %arg1[%c0_6, %c0_7, %c0_8] : memref<1x2x32xf32, #tpu.memory_space<vmem>>, vector<1x2x32xf32>
    %7 = vector.shape_cast %6 : vector<1x2x32xf32> to vector<2x32xf32>
    %c0_9 = arith.constant 0 : index
    %c0_10 = arith.constant 0 : index
    %8 = vector.load %arg4[%c0_9, %c0_10] : memref<32x256xf32, #tpu.memory_space<vmem>>, vector<32x256xf32>
    %cst = arith.constant dense<0.000000e+00> : vector<2x256xf32>
    %9 = tpu.matmul %7, %8, %cst {dimension_numbers = #tpu.dot_dimension_numbers<[1], [0], [0], [1], [0, 0, 1, 1], [], []>} : vector<2x32xf32>, vector<32x256xf32>, vector<2x256xf32> -> vector<2x256xf32>
    %c0_11 = arith.constant 0 : index
    %c0_12 = arith.constant 0 : index
    %10 = vector.load %arg5[%c0_11, %c0_12] : memref<64x256xf32, #tpu.memory_space<vmem>>, vector<64x256xf32>
    %cst_13 = arith.constant dense<0.000000e+00> : vector<2x256xf32>
    %11 = tpu.matmul %4, %10, %cst_13 {dimension_numbers = #tpu.dot_dimension_numbers<[1], [0], [0], [1], [0, 0, 1, 1], [], []>} : vector<2x64xf32>, vector<64x256xf32>, vector<2x256xf32> -> vector<2x256xf32>
    %12 = arith.addf %9, %11 : vector<2x256xf32>
    %c0_14 = arith.constant 0 : index
    %c0_15 = arith.constant 0 : index
    %13 = vector.load %arg6[%c0_14, %c0_15] : memref<1x256xf32, #tpu.memory_space<vmem>>, vector<1x256xf32>
    %14 = vector.broadcast %13 : vector<1x256xf32> to vector<2x256xf32>
    %15 = arith.addf %12, %14 : vector<2x256xf32>
    %16 = vector.extract_strided_slice %15 {offsets = [0, 0], sizes = [2, 64], strides = [1, 1]} : vector<2x256xf32> to vector<2x64xf32>
    %17 = arith.negf %16 : vector<2x64xf32>
    %18 = math.exp %17 : vector<2x64xf32>
    %cst_16 = arith.constant 1.000000e+00 : f32
    %19 = vector.broadcast %cst_16 : f32 to vector<2x64xf32>
    %20 = arith.addf %19, %18 : vector<2x64xf32>
    %21 = arith.divf %19, %20 : vector<2x64xf32>
    %22 = vector.extract_strided_slice %15 {offsets = [0, 64], sizes = [2, 64], strides = [1, 1]} : vector<2x256xf32> to vector<2x64xf32>
    %23 = arith.negf %22 : vector<2x64xf32>
    %24 = math.exp %23 : vector<2x64xf32>
    %cst_17 = arith.constant 1.000000e+00 : f32
    %25 = vector.broadcast %cst_17 : f32 to vector<2x64xf32>
    %26 = arith.addf %25, %24 : vector<2x64xf32>
    %27 = arith.divf %25, %26 : vector<2x64xf32>
    %28 = vector.extract_strided_slice %15 {offsets = [0, 128], sizes = [2, 64], strides = [1, 1]} : vector<2x256xf32> to vector<2x64xf32>
    %29 = math.tanh %28 : vector<2x64xf32>
    %30 = vector.extract_strided_slice %15 {offsets = [0, 192], sizes = [2, 64], strides = [1, 1]} : vector<2x256xf32> to vector<2x64xf32>
    %31 = arith.negf %30 : vector<2x64xf32>
    %32 = math.exp %31 : vector<2x64xf32>
    %cst_18 = arith.constant 1.000000e+00 : f32
    %33 = vector.broadcast %cst_18 : f32 to vector<2x64xf32>
    %34 = arith.addf %33, %32 : vector<2x64xf32>
    %35 = arith.divf %33, %34 : vector<2x64xf32>
    %36 = arith.mulf %27, %5 : vector<2x64xf32>
    %37 = arith.mulf %21, %29 : vector<2x64xf32>
    %38 = arith.addf %36, %37 : vector<2x64xf32>
    %39 = math.tanh %38 : vector<2x64xf32>
    %40 = arith.mulf %35, %39 : vector<2x64xf32>
    %41 = vector.broadcast %arg0 : i32 to vector<2x1xi32>
    %42 = arith.cmpi slt, %41, %3 : vector<2x1xi32>
    %43 = vector.shape_cast %42 : vector<2x1xi1> to vector<2x1xi1>
    %44 = vector.broadcast %43 : vector<2x1xi1> to vector<2x64xi1>
    %45 = arith.select %44, %40, %4 : vector<2x64xi1>, vector<2x64xf32>
    %c0_19 = arith.constant 0 : index
    %c0_20 = arith.constant 0 : index
    %46 = vector.load %arg20[%c0_19, %c0_20] : memref<2x64xf32, #tpu.memory_space<vmem>>, vector<2x64xf32>
    tpu.vector_store %arg20[%c0_19, %c0_20], %45 {strides = array<i32>} : memref<2x64xf32, #tpu.memory_space<vmem>>, vector<2x64xf32>,
    %47 = vector.shape_cast %42 : vector<2x1xi1> to vector<2x1xi1>
    %48 = vector.broadcast %47 : vector<2x1xi1> to vector<2x64xi1>
    %49 = arith.select %48, %38, %5 : vector<2x64xi1>, vector<2x64xf32>
    %c0_21 = arith.constant 0 : index
    %c0_22 = arith.constant 0 : index
    %50 = vector.load %arg21[%c0_21, %c0_22] : memref<2x64xf32, #tpu.memory_space<vmem>>, vector<2x64xf32>
    tpu.vector_store %arg21[%c0_21, %c0_22], %49 {strides = array<i32>} : memref<2x64xf32, #tpu.memory_space<vmem>>, vector<2x64xf32>,
    %cst_23 = arith.constant 0.000000e+00 : f32
    %51 = vector.shape_cast %42 : vector<2x1xi1> to vector<2x1xi1>
    %52 = vector.broadcast %51 : vector<2x1xi1> to vector<2x64xi1>
    %53 = vector.broadcast %cst_23 : f32 to vector<2x64xf32>
    %54 = arith.select %52, %40, %53 : vector<2x64xi1>, vector<2x64xf32>
    %c0_24 = arith.constant 0 : index
    %c0_25 = arith.constant 0 : index
    %c0_26 = arith.constant 0 : index
    %55 = vector.load %arg14[%c0_24, %c0_25, %c0_26] : memref<1x2x64xf32, #tpu.memory_space<vmem>>, vector<1x2x64xf32>
    %56 = vector.shape_cast %55 : vector<1x2x64xf32> to vector<2x64xf32>
    %57 = vector.shape_cast %54 : vector<2x64xf32> to vector<1x2x64xf32>
    tpu.vector_store %arg14[%c0_24, %c0_25, %c0_26], %57 {strides = array<i32>} : memref<1x2x64xf32, #tpu.memory_space<vmem>>, vector<1x2x64xf32>,
    %c7_i32 = arith.constant 7 : i32
    %58 = arith.subi %c7_i32, %arg0 : i32
    %c0_27 = arith.constant 0 : index
    %c0_28 = arith.constant 0 : index
    %59 = vector.load %arg22[%c0_27, %c0_28] : memref<2x64xf32, #tpu.memory_space<vmem>>, vector<2x64xf32>
    %c0_29 = arith.constant 0 : index
    %c0_30 = arith.constant 0 : index
    %60 = vector.load %arg23[%c0_29, %c0_30] : memref<2x64xf32, #tpu.memory_space<vmem>>, vector<2x64xf32>
    %c0_31 = arith.constant 0 : index
    %c0_32 = arith.constant 0 : index
    %c0_33 = arith.constant 0 : index
    %61 = vector.load %arg2[%c0_31, %c0_32, %c0_33] : memref<1x2x32xf32, #tpu.memory_space<vmem>>, vector<1x2x32xf32>
    %62 = vector.shape_cast %61 : vector<1x2x32xf32> to vector<2x32xf32>
    %c0_34 = arith.constant 0 : index
    %c0_35 = arith.constant 0 : index
    %63 = vector.load %arg7[%c0_34, %c0_35] : memref<32x256xf32, #tpu.memory_space<vmem>>, vector<32x256xf32>
    %cst_36 = arith.constant dense<0.000000e+00> : vector<2x256xf32>
    %64 = tpu.matmul %62, %63, %cst_36 {dimension_numbers = #tpu.dot_dimension_numbers<[1], [0], [0], [1], [0, 0, 1, 1], [], []>} : vector<2x32xf32>, vector<32x256xf32>, vector<2x256xf32> -> vector<2x256xf32>
    %c0_37 = arith.constant 0 : index
    %c0_38 = arith.constant 0 : index
    %65 = vector.load %arg8[%c0_37, %c0_38] : memref<64x256xf32, #tpu.memory_space<vmem>>, vector<64x256xf32>
    %cst_39 = arith.constant dense<0.000000e+00> : vector<2x256xf32>
    %66 = tpu.matmul %59, %65, %cst_39 {dimension_numbers = #tpu.dot_dimension_numbers<[1], [0], [0], [1], [0, 0, 1, 1], [], []>} : vector<2x64xf32>, vector<64x256xf32>, vector<2x256xf32> -> vector<2x256xf32>
    %67 = arith.addf %64, %66 : vector<2x256xf32>
    %c0_40 = arith.constant 0 : index
    %c0_41 = arith.constant 0 : index
    %68 = vector.load %arg9[%c0_40, %c0_41] : memref<1x256xf32, #tpu.memory_space<vmem>>, vector<1x256xf32>
    %69 = vector.broadcast %68 : vector<1x256xf32> to vector<2x256xf32>
    %70 = arith.addf %67, %69 : vector<2x256xf32>
    %71 = vector.extract_strided_slice %70 {offsets = [0, 0], sizes = [2, 64], strides = [1, 1]} : vector<2x256xf32> to vector<2x64xf32>
    %72 = arith.negf %71 : vector<2x64xf32>
    %73 = math.exp %72 : vector<2x64xf32>
    %cst_42 = arith.constant 1.000000e+00 : f32
    %74 = vector.broadcast %cst_42 : f32 to vector<2x64xf32>
    %75 = arith.addf %74, %73 : vector<2x64xf32>
    %76 = arith.divf %74, %75 : vector<2x64xf32>
    %77 = vector.extract_strided_slice %70 {offsets = [0, 64], sizes = [2, 64], strides = [1, 1]} : vector<2x256xf32> to vector<2x64xf32>
    %78 = arith.negf %77 : vector<2x64xf32>
    %79 = math.exp %78 : vector<2x64xf32>
    %cst_43 = arith.constant 1.000000e+00 : f32
    %80 = vector.broadcast %cst_43 : f32 to vector<2x64xf32>
    %81 = arith.addf %80, %79 : vector<2x64xf32>
    %82 = arith.divf %80, %81 : vector<2x64xf32>
    %83 = vector.extract_strided_slice %70 {offsets = [0, 128], sizes = [2, 64], strides = [1, 1]} : vector<2x256xf32> to vector<2x64xf32>
    %84 = math.tanh %83 : vector<2x64xf32>
    %85 = vector.extract_strided_slice %70 {offsets = [0, 192], sizes = [2, 64], strides = [1, 1]} : vector<2x256xf32> to vector<2x64xf32>
    %86 = arith.negf %85 : vector<2x64xf32>
    %87 = math.exp %86 : vector<2x64xf32>
    %cst_44 = arith.constant 1.000000e+00 : f32
    %88 = vector.broadcast %cst_44 : f32 to vector<2x64xf32>
    %89 = arith.addf %88, %87 : vector<2x64xf32>
    %90 = arith.divf %88, %89 : vector<2x64xf32>
    %91 = arith.mulf %82, %60 : vector<2x64xf32>
    %92 = arith.mulf %76, %84 : vector<2x64xf32>
    %93 = arith.addf %91, %92 : vector<2x64xf32>
    %94 = math.tanh %93 : vector<2x64xf32>
    %95 = arith.mulf %90, %94 : vector<2x64xf32>
    %96 = vector.broadcast %58 : i32 to vector<2x1xi32>
    %97 = arith.cmpi slt, %96, %3 : vector<2x1xi32>
    %98 = vector.shape_cast %97 : vector<2x1xi1> to vector<2x1xi1>
    %99 = vector.broadcast %98 : vector<2x1xi1> to vector<2x64xi1>
    %100 = arith.select %99, %95, %59 : vector<2x64xi1>, vector<2x64xf32>
    %c0_45 = arith.constant 0 : index
    %c0_46 = arith.constant 0 : index
    %101 = vector.load %arg22[%c0_45, %c0_46] : memref<2x64xf32, #tpu.memory_space<vmem>>, vector<2x64xf32>
    tpu.vector_store %arg22[%c0_45, %c0_46], %100 {strides = array<i32>} : memref<2x64xf32, #tpu.memory_space<vmem>>, vector<2x64xf32>,
    %102 = vector.shape_cast %97 : vector<2x1xi1> to vector<2x1xi1>
    %103 = vector.broadcast %102 : vector<2x1xi1> to vector<2x64xi1>
    %104 = arith.select %103, %93, %60 : vector<2x64xi1>, vector<2x64xf32>
    %c0_47 = arith.constant 0 : index
    %c0_48 = arith.constant 0 : index
    %105 = vector.load %arg23[%c0_47, %c0_48] : memref<2x64xf32, #tpu.memory_space<vmem>>, vector<2x64xf32>
    tpu.vector_store %arg23[%c0_47, %c0_48], %104 {strides = array<i32>} : memref<2x64xf32, #tpu.memory_space<vmem>>, vector<2x64xf32>,
    %cst_49 = arith.constant 0.000000e+00 : f32
    %106 = vector.shape_cast %97 : vector<2x1xi1> to vector<2x1xi1>
    %107 = vector.broadcast %106 : vector<2x1xi1> to vector<2x64xi1>
    %108 = vector.broadcast %cst_49 : f32 to vector<2x64xf32>
    %109 = arith.select %107, %95, %108 : vector<2x64xi1>, vector<2x64xf32>
    %c0_50 = arith.constant 0 : index
    %c0_51 = arith.constant 0 : index
    %c0_52 = arith.constant 0 : index
    %110 = vector.load %arg15[%c0_50, %c0_51, %c0_52] : memref<1x2x64xf32, #tpu.memory_space<vmem>>, vector<1x2x64xf32>
    %111 = vector.shape_cast %110 : vector<1x2x64xf32> to vector<2x64xf32>
    %112 = vector.shape_cast %109 : vector<2x64xf32> to vector<1x2x64xf32>
    tpu.vector_store %arg15[%c0_50, %c0_51, %c0_52], %112 {strides = array<i32>} : memref<1x2x64xf32, #tpu.memory_space<vmem>>, vector<1x2x64xf32>,
    %c7_i32_53 = arith.constant 7 : i32
    %113 = arith.cmpi eq, %arg0, %c7_i32_53 : i32
    %114 = arith.extui %113 : i1 to i32
    %c0_i32_54 = arith.constant 0 : i32
    %115 = arith.cmpi ne, %114, %c0_i32_54 : i32
    scf.if %115 {
      %c0_55 = arith.constant 0 : index
      %c0_56 = arith.constant 0 : index
      %116 = vector.load %arg20[%c0_55, %c0_56] : memref<2x64xf32, #tpu.memory_space<vmem>>, vector<2x64xf32>
      %c0_57 = arith.constant 0 : index
      %c0_58 = arith.constant 0 : index
      %117 = vector.load %arg22[%c0_57, %c0_58] : memref<2x64xf32, #tpu.memory_space<vmem>>, vector<2x64xf32>
      %118 = tpu.concatenate %116, %117 in 1 : vector<2x64xf32>, vector<2x64xf32> -> vector<2x128xf32>
      %c0_59 = arith.constant 0 : index
      %c0_60 = arith.constant 0 : index
      %119 = vector.load %arg21[%c0_59, %c0_60] : memref<2x64xf32, #tpu.memory_space<vmem>>, vector<2x64xf32>
      %c0_61 = arith.constant 0 : index
      %c0_62 = arith.constant 0 : index
      %120 = vector.load %arg23[%c0_61, %c0_62] : memref<2x64xf32, #tpu.memory_space<vmem>>, vector<2x64xf32>
      %121 = tpu.concatenate %119, %120 in 1 : vector<2x64xf32>, vector<2x64xf32> -> vector<2x128xf32>
      %c0_63 = arith.constant 0 : index
      %c0_64 = arith.constant 0 : index
      %122 = vector.load %arg16[%c0_63, %c0_64] : memref<2x128xf32, #tpu.memory_space<vmem>>, vector<2x128xf32>
      tpu.vector_store %arg16[%c0_63, %c0_64], %118 {strides = array<i32>} : memref<2x128xf32, #tpu.memory_space<vmem>>, vector<2x128xf32>,
      %c0_65 = arith.constant 0 : index
      %c0_66 = arith.constant 0 : index
      %123 = vector.load %arg17[%c0_65, %c0_66] : memref<2x128xf32, #tpu.memory_space<vmem>>, vector<2x128xf32>
      tpu.vector_store %arg17[%c0_65, %c0_66], %121 {strides = array<i32>} : memref<2x128xf32, #tpu.memory_space<vmem>>, vector<2x128xf32>,
      %c0_67 = arith.constant 0 : index
      %c0_68 = arith.constant 0 : index
      %124 = vector.load %arg10[%c0_67, %c0_68] : memref<128x64xf32, #tpu.memory_space<vmem>>, vector<128x64xf32>
      %cst_69 = arith.constant dense<0.000000e+00> : vector<2x64xf32>
      %125 = tpu.matmul %118, %124, %cst_69 {dimension_numbers = #tpu.dot_dimension_numbers<[1], [0], [0], [1], [0, 0, 1, 1], [], []>} : vector<2x128xf32>, vector<128x64xf32>, vector<2x64xf32> -> vector<2x64xf32>
      %c0_70 = arith.constant 0 : index
      %c0_71 = arith.constant 0 : index
      %126 = vector.load %arg11[%c0_70, %c0_71] : memref<1x64xf32, #tpu.memory_space<vmem>>, vector<1x64xf32>
      %127 = vector.broadcast %126 : vector<1x64xf32> to vector<2x64xf32>
      %128 = arith.addf %125, %127 : vector<2x64xf32>
      %c0_72 = arith.constant 0 : index
      %c0_73 = arith.constant 0 : index
      %129 = vector.load %arg18[%c0_72, %c0_73] : memref<2x64xf32, #tpu.memory_space<vmem>>, vector<2x64xf32>
      tpu.vector_store %arg18[%c0_72, %c0_73], %128 {strides = array<i32>} : memref<2x64xf32, #tpu.memory_space<vmem>>, vector<2x64xf32>,
      %c0_74 = arith.constant 0 : index
      %c0_75 = arith.constant 0 : index
      %130 = vector.load %arg12[%c0_74, %c0_75] : memref<128x64xf32, #tpu.memory_space<vmem>>, vector<128x64xf32>
      %cst_76 = arith.constant dense<0.000000e+00> : vector<2x64xf32>
      %131 = tpu.matmul %121, %130, %cst_76 {dimension_numbers = #tpu.dot_dimension_numbers<[1], [0], [0], [1], [0, 0, 1, 1], [], []>} : vector<2x128xf32>, vector<128x64xf32>, vector<2x64xf32> -> vector<2x64xf32>
      %c0_77 = arith.constant 0 : index
      %c0_78 = arith.constant 0 : index
      %132 = vector.load %arg13[%c0_77, %c0_78] : memref<1x64xf32, #tpu.memory_space<vmem>>, vector<1x64xf32>
      %133 = vector.broadcast %132 : vector<1x64xf32> to vector<2x64xf32>
      %134 = arith.addf %131, %133 : vector<2x64xf32>
      %c0_79 = arith.constant 0 : index
      %c0_80 = arith.constant 0 : index
      %135 = vector.load %arg19[%c0_79, %c0_80] : memref<2x64xf32, #tpu.memory_space<vmem>>, vector<2x64xf32>
      tpu.vector_store %arg19[%c0_79, %c0_80], %134 {strides = array<i32>} : memref<2x64xf32, #tpu.memory_space<vmem>>, vector<2x64xf32>,
    } else {
    }
    return
  }
  func.func @transform_0(%arg0: i32) -> (i32, i32, i32) {
    %c0_i32 = arith.constant 0 : i32
    %c0_i32_0 = arith.constant 0 : i32
    %c0_i32_1 = arith.constant 0 : i32
    return %arg0, %c0_i32, %c0_i32_0 : i32, i32, i32
  }
  func.func @transform_1(%arg0: i32) -> (i32, i32, i32) {
    %c7_i32 = arith.constant 7 : i32
    %0 = arith.subi %c7_i32, %arg0 : i32
    %c0_i32 = arith.constant 0 : i32
    %c0_i32_0 = arith.constant 0 : i32
    %c0_i32_1 = arith.constant 0 : i32
    return %0, %c0_i32, %c0_i32_0 : i32, i32, i32
  }
  func.func @transform_2(%arg0: i32) -> (i32, i32) {
    %c0_i32 = arith.constant 0 : i32
    %c0_i32_0 = arith.constant 0 : i32
    %c0_i32_1 = arith.constant 0 : i32
    return %c0_i32, %c0_i32_0 : i32, i32
  }
  func.func @transform_3(%arg0: i32) -> (i32, i32) {
    %c0_i32 = arith.constant 0 : i32
    %c0_i32_0 = arith.constant 0 : i32
    %c0_i32_1 = arith.constant 0 : i32
    return %c0_i32, %c0_i32_0 : i32, i32
  }
  func.func @transform_4(%arg0: i32) -> (i32, i32) {
    %c0_i32 = arith.constant 0 : i32
    %c0_i32_0 = arith.constant 0 : i32
    %c0_i32_1 = arith.constant 0 : i32
    return %c0_i32, %c0_i32_0 : i32, i32
  }
  func.func @transform_5(%arg0: i32) -> (i32, i32) {
    %c0_i32 = arith.constant 0 : i32
    %c0_i32_0 = arith.constant 0 : i32
    %c0_i32_1 = arith.constant 0 : i32
    return %c0_i32, %c0_i32_0 : i32, i32
  }
  func.func @transform_6(%arg0: i32) -> (i32, i32) {
    %c0_i32 = arith.constant 0 : i32
    %c0_i32_0 = arith.constant 0 : i32
    %c0_i32_1 = arith.constant 0 : i32
    return %c0_i32, %c0_i32_0 : i32, i32
  }
  func.func @transform_7(%arg0: i32) -> (i32, i32) {
    %c0_i32 = arith.constant 0 : i32
    %c0_i32_0 = arith.constant 0 : i32
    %c0_i32_1 = arith.constant 0 : i32
    return %c0_i32, %c0_i32_0 : i32, i32
  }
  func.func @transform_8(%arg0: i32) -> (i32, i32) {
    %c0_i32 = arith.constant 0 : i32
    %c0_i32_0 = arith.constant 0 : i32
    %c0_i32_1 = arith.constant 0 : i32
    return %c0_i32, %c0_i32_0 : i32, i32
  }
  func.func @transform_9(%arg0: i32) -> (i32, i32) {
    %c0_i32 = arith.constant 0 : i32
    %c0_i32_0 = arith.constant 0 : i32
    %c0_i32_1 = arith.constant 0 : i32
    return %c0_i32, %c0_i32_0 : i32, i32
  }
  func.func @transform_10(%arg0: i32) -> (i32, i32) {
    %c0_i32 = arith.constant 0 : i32
    %c0_i32_0 = arith.constant 0 : i32
    %c0_i32_1 = arith.constant 0 : i32
    return %c0_i32, %c0_i32_0 : i32, i32
  }
  func.func @transform_11(%arg0: i32) -> (i32, i32) {
    %c0_i32 = arith.constant 0 : i32
    %c0_i32_0 = arith.constant 0 : i32
    %c0_i32_1 = arith.constant 0 : i32
    return %c0_i32, %c0_i32_0 : i32, i32
  }
  func.func @transform_12(%arg0: i32) -> (i32, i32) {
    %c0_i32 = arith.constant 0 : i32
    %c0_i32_0 = arith.constant 0 : i32
    %c0_i32_1 = arith.constant 0 : i32
    return %c0_i32, %c0_i32_0 : i32, i32
  }
  func.func @transform_13(%arg0: i32) -> (i32, i32, i32) {
    %c0_i32 = arith.constant 0 : i32
    %c0_i32_0 = arith.constant 0 : i32
    %c0_i32_1 = arith.constant 0 : i32
    return %arg0, %c0_i32, %c0_i32_0 : i32, i32, i32
  }
  func.func @transform_14(%arg0: i32) -> (i32, i32, i32) {
    %c7_i32 = arith.constant 7 : i32
    %0 = arith.subi %c7_i32, %arg0 : i32
    %c0_i32 = arith.constant 0 : i32
    %c0_i32_0 = arith.constant 0 : i32
    %c0_i32_1 = arith.constant 0 : i32
    return %0, %c0_i32, %c0_i32_0 : i32, i32, i32
  }
  func.func @transform_15(%arg0: i32) -> (i32, i32) {
    %c0_i32 = arith.constant 0 : i32
    %c0_i32_0 = arith.constant 0 : i32
    %c0_i32_1 = arith.constant 0 : i32
    return %c0_i32, %c0_i32_0 : i32, i32
  }
  func.func @transform_16(%arg0: i32) -> (i32, i32) {
    %c0_i32 = arith.constant 0 : i32
    %c0_i32_0 = arith.constant 0 : i32
    %c0_i32_1 = arith.constant 0 : i32
    return %c0_i32, %c0_i32_0 : i32, i32
  }
  func.func @transform_17(%arg0: i32) -> (i32, i32) {
    %c0_i32 = arith.constant 0 : i32
    %c0_i32_0 = arith.constant 0 : i32
    %c0_i32_1 = arith.constant 0 : i32
    return %c0_i32, %c0_i32_0 : i32, i32
  }
  func.func @transform_18(%arg0: i32) -> (i32, i32) {
    %c0_i32 = arith.constant 0 : i32
    %c0_i32_0 = arith.constant 0 : i32
    %c0_i32_1 = arith.constant 0 : i32
    return %c0_i32, %c0_i32_0 : i32, i32
  }
}

</mosaic_0001>

<bundles_post_ra>
// kernel: tpu_custom_call.1
= control target key start
LH: loop header
LB: loop body
LE: loop exit
PB: predicated region body
PF: predicated region fallthrough
CT: control target
= control target key end

     0   :  { %s2680_s0 = inlined_call_operand.hbm [shape: f32[8,2,32], index: 0, kind: input, shape index: {}]   ;;  %s2681_s1 = inlined_call_operand.hbm [shape: f32[8,2,32], index: 1, kind: input, shape index: {}]   ;;  %s2682_s2 = inlined_call_operand.vmem [shape: s32[2,1], index: 2, kind: input, shape index: {}]   ;;  %s2683_s3 = inlined_call_operand.vmem [shape: f32[32,256], index: 3, kind: input, shape index: {}]   ;;  %s2684_s4 = inlined_call_operand.vmem [shape: f32[64,256], index: 4, kind: input, shape index: {}]   ;;  %s2685_s5 = inlined_call_operand.vmem [shape: f32[1,256], index: 5, kind: input, shape index: {}]   ;;  %s2686_s6 = inlined_call_operand.hbm [shape: f32[32,256], index: 6, kind: input, shape index: {}]   ;;  %s2687_s7 = inlined_call_operand.vmem [shape: f32[64,256], index: 7, kind: input, shape index: {}]   ;;  %s2688_s8 = inlined_call_operand.vmem [shape: f32[1,256], index: 8, kind: input, shape index: {}]   ;;  %s2689_s9 = inlined_call_operand.vmem [shape: f32[128,64], index: 9, kind: input, shape index: {}]   ;;  %s2690_s10 = inlined_call_operand.vmem [shape: f32[1,64], index: 10, kind: input, shape index: {}]   ;;  %s2691_s11 = inlined_call_operand.vmem [shape: f32[128,64], index: 11, kind: input, shape index: {}]   ;;  %s2692_s12 = inlined_call_operand.vmem [shape: f32[1,64], index: 12, kind: input, shape index: {}]   ;;  %s2693_s13 = inlined_call_operand.hbm [shape: f32[8,2,64], index: 13, kind: output, shape index: {0}]   ;;  %s2694_s14 = inlined_call_operand.hbm [shape: f32[8,2,64], index: 14, kind: output, shape index: {1}]   ;;  %s2695_s15 = inlined_call_operand.hbm [shape: f32[2,128], index: 15, kind: output, shape index: {2}]   ;;  %s2696_s16 = inlined_call_operand.hbm [shape: f32[2,128], index: 16, kind: output, shape index: {3}]   ;;  %s2697_s17 = inlined_call_operand.hbm [shape: f32[2,64], index: 17, kind: output, shape index: {4}]   ;;  %s2698_s18 = inlined_call_operand.hbm [shape: f32[2,64], index: 18, kind: output, shape index: {5}]  }
   0x1   :  { %2719 = sst [smem:[#allocation36_spill]] %s2680_s0 }
   0x2   :  { %2720 = sst [smem:[#allocation37_spill]] %s2681_s1 }
   0x3   :  { %2721 = sst [smem:[#allocation38_spill]] %s2682_s2 }
   0x4   :  { %2722 = sst [smem:[#allocation39_spill]] %s2683_s3 }
   0x5   :  { %2723 = sst [smem:[#allocation40_spill]] %s2684_s4 }
   0x6   :  { %2724 = sst [smem:[#allocation41_spill]] %s2685_s5 }
   0x7   :  { %2725 = sst [smem:[#allocation42_spill]] %s2686_s6 }
   0x8   :  { %2726 = sst [smem:[#allocation43_spill]] %s2690_s10 }
   0x9   :  { %2727 = sst [smem:[#allocation44_spill]] %s2691_s11 }
   0xa   :  { %2728 = sst [smem:[#allocation45_spill]] %s2692_s12 }
   0xb   :  { %2729 = sst [smem:[#allocation46_spill]] %s2693_s13 }
   0xc   :  { %2730 = sst [smem:[#allocation47_spill]] %s2694_s14 }
   0xd   :  { %2731 = sst [smem:[#allocation48_spill]] %s2695_s15 }
   0xe   :  { %2732 = sst [smem:[#allocation49_spill]] %s2696_s16 }
   0xf   :  { %2733 = sst [smem:[#allocation50_spill]] %s2697_s17 }
  0x10   :  { %2734 = sst [smem:[#allocation51_spill]] %s2698_s18 }
  0x11   :  { %24 = vsyncpa [#allocation7], 0 }
  0x12   :  { %26 = vsyncpa [#allocation7 + $0x1], 0 }
  0x13   :  { %27 = vsyncpa [#allocation10], 0 }
  0x14   :  { %29 = vsyncpa [#allocation10 + $0x1], 0 }
  0x15   :  { %30 = vsyncpa [#allocation8], 0 }
  0x16   :  { %32 = vsyncpa [#allocation8 + $0x1], 0 }
  0x17   :  { %33 = vsyncpa [#allocation14], 0 }
  0x18   :  { %35 = vsyncpa [#allocation14 + $0x1], 0 }
  0x19   :  { %36 = vsyncpa [#allocation17], 0 }
  0x1a   :  { %37 = vsyncpa [#allocation20], 0  ;;  %s2086_s27 = smov 0   ;;  %s2088_s28 = smov 0  }
  0x1b   :  { %s2090_s29 = smov 0   ;;  %s2092_s30 = smov 0  }
  0x1c   :  { %s2094_s0 = smov 0   ;;  %s2096_s19 = smov 0  }
  0x1d   :  { %s2098_s1 = smov 0  }
  0x1e LB: > { %2735 = sst [smem:[#allocation29_spill]] %s1966_s30  ;;  %s2125_s2 = sadd.s32 4294967295, %s1978_s1   ;;  %s1978_s1 = sphi %s2098_s1, %s2796_s1   ;;  %s1974_s19 = sphi %s2096_s19, %s2799_s19   ;;  %s1970_s0 = sphi %s2094_s0, %s2804_s0   ;;  %s1966_s30 = sphi %s2092_s30, %s2803_s30   ;;  %s1962_s29 = sphi %s2090_s29, %s2802_s29   ;;  %s1958_s28 = sphi %s2088_s28, %s2801_s28   ;;  %s1954_s27 = sphi %s2086_s27, %s2800_s27  }
  0x1f   : > { %2736 = sst [smem:[#allocation30_spill]] %s1974_s19  ;;  %p1440_p0 = scmp.ge.s32.totalorder %s1978_s1, 1 }
  0x20   : > { %s2737_s6 = sld [smem:[#allocation42_spill]]  ;;  %p2712_p1 = scmp.eq.s32.totalorder %s2125_s2, 0 }
  0x21   : > { %p471_p2 = scmp.lt.s32.totalorder %s1978_s1, 9  ;;  %s1980_s24 = smov [#allocation11]  }
  0x22   : > { %s496_s25 = sshll.u32 %s1980_s24, 4  ;;  %s1981_s26 = smov 256   ;;  %s497_s25 = int_to_ptr.vmem [resolvable:$true] %s496_s25 }
  0x23   : > { %p2131_p4 = pnand %p1440_p0, %p471_p2  ;;  %s1982_s20 = smov 16  }
  0x24   : > { %s2701_s21 = sadd.s32 4294967294, %s1978_s1   ;;  %p57_p7 = scmp.ne.s32.totalorder %s1974_s19, %s1970_s0 }
  0x25   : > { %p1509_p5 = pneg %p2131_p4  ;;  %p2709_p8 = scmp.eq.s32.totalorder %s1978_s1, 0 }
  0x26   : > { %s494_s22 = sshll.u32 %s2737_s6, 4  ;;  %p63_p9 = scmp.ne.s32.totalorder %s1970_s0, %s1966_s30  ;;  %s495_s22 = int_to_ptr.hbm [resolvable:$true] %s494_s22 }
  0x27   : > { %p1510_p6 = pnand %p1509_p5, %p2712_p1  ;;  %p2711_p10 = scmp.eq.s32.totalorder %s2125_s2, 7 }
  0x28   : > { %p2149_p11 = scmp.eq.s32.totalorder %s2701_s21, 7  ;;  %p2155_p12 = por %p2709_p8, %p57_p7 }
  0x29   : > { %1512 = dma.hbm_to_vmem [thread:$0]  (!%p1510_p6), %s495_s22, 1024, %s497_s25, [#allocation10], %s1981_s26, %s1981_s26, %s1982_s20  }
  0x2a   : > { %p2161_p13 = por %p2712_p1, %p63_p9  ;;  %p2167_p0 = por %p2711_p10, %p57_p7 }
  0x2b   : > { %p2173_p2 = por %p2149_p11, %p63_p9  ;;  %p2710_p5 = scmp.lt.s32.totalorder %s1978_s1, 8 }
  0x2c   : > { %s2742_s25 = scalar_select %p2167_p0, 1, 0 }
  0x2d   : > { %s2744_s26 = scalar_select %p2173_p2, 1, 0 }
  0x2e   : > { %2743 = sst [smem:[#allocation31_spill]] %s2742_s25  ;;  %s528_s20 = sand.u32 1, %s1974_s19  }
  0x2f   : > { %2745 = sst [smem:[#allocation32_spill]] %s2744_s26  ;;  %s1443_s21 = sshll.u32 %s528_s20, 1 }
  0x30   : > { %s1444_s6 = sshll.u32 %s1978_s1, 1  ;;  %s2746_s15 = sld [smem:[#allocation36_spill]] }
  0x31   : > { %s532_s16 = scalar_lea.vmem [#allocation6], %s1443_s21  ;;  %p2187_p6 = pnand %p2710_p5, %p2155_p12 }
  0x32   : > { %s540_s14 = sshll.u32 %s532_s16, 4  ;;  %s529_s26 = scalar_lea.sflag [#allocation7], %s528_s20  ;;  %s541_s14 = int_to_ptr.vmem [resolvable:$true] %s540_s14 }
  0x33   : > { %p1668_p9 = pneg %p2187_p6 }
  0x36   : > { %s536_s13 = scalar_lea.hbm %s2746_s15, %s1444_s6  ;;  %s1671_s16 = scalar_lea.hbm %s2746_s15, 16 }
  0x37   : > { %s538_s12 = sshll.u32 %s536_s13, 4  ;;  %s539_s12 = int_to_ptr.hbm [resolvable:$true] %s538_s12 }
  0x38   : > { %s1664_s10 = sshra.s32 %s539_s12, 4  ;;  %s1665_s10 = int_to_ptr.hbm [resolvable:$true] %s1664_s10 }
  0x39   : > { %s1666_s11 = scalar_lea.hbm %s1665_s10, 2  ;;  %p1672_p12 = scmp.lt.s32.totalorder %s1665_s10, %s2746_s15 }
  0x3a   : > { %p1667_p7 = scmp.ne.s32.totalorder %s1665_s10, %s1666_s11  ;;  %p1673_p5 = scmp.lt.s32.totalorder %s1671_s16, %s1666_s11 }
  0x3c   : > { %p1669_p3 = pnand %p1668_p9, %p1667_p7  ;;  %p1674_p10 = por %p1673_p5, %p1672_p12 }
  0x3e   : > { %p1670_p8 = pneg %p1669_p3 }
  0x40   : > { %p1675_p1 = pnand %p1674_p10, %p1670_p8 }
  0x42   : > { %1678 = shalt.err (!%p1675_p1)
}
  0x43   : > { %1516 = dma.hbm_to_vmem [thread:$0]  (!%p2187_p6), %s539_s12, 32, %s541_s14, %s529_s26  }
  0x44   : > { %s2202_s10 = sadd.s32 1, %s1978_s1   ;;  %s73_s30 = ssub.s32 7, %s1978_s1 }
  0x45   : > { %2748 = sst [smem:[#allocation33_spill]] %s2202_s10  ;;  %s47_s11 = ssub.s32 %s1978_s1, %s2202_s10 }
  0x46   : > { %p48_p1 = scmp.eq.s32.totalorder %s47_s11, 0  ;;  %s74_s21 = ssub.s32 7, %s2202_s10 }
  0x47   : > { %s75_s25 = ssub.s32 %s73_s30, %s74_s21  ;;  %s78_s20 = sadd.s32 1, %s1962_s29 }
  0x48   : > { %s2749_s6 = sadd.s32 1, %s1974_s19  ;;  %p76_p3 = scmp.eq.s32.totalorder %s75_s25, 0 }
  0x49   : > { %s2212_s13 = scalar_select %p48_p1, %s1974_s19, %s2749_s6  }
  0x4a   : > { %p85_p8 = scmp.ne.s32.totalorder %s1962_s29, %s1958_s28  ;;  %p91_p10 = scmp.ne.s32.totalorder %s1958_s28, %s1954_s27 }
  0x4b   : > { %2750 = sst [smem:[#allocation34_spill]] %s2212_s13  ;;  %p2752_p5 = scmp.eq.s32.totalorder %s2125_s2, 0 }
  0x4c   : > { %s2219_s12 = scalar_select %p76_p3, %s1962_s29, %s78_s20  }
  0x4d   : > { %p2223_p6 = por %p91_p10, %p2752_p5  ;;  %s547_s26 = sand.u32 1, %s1978_s1  }
  0x4e   : > { %2751 = sst [smem:[#allocation35_spill]] %s2219_s12  ;;  %p2754_p7 = scmp.eq.s32.totalorder %s2125_s2, 7 }
  0x4f   : > { %p2236_p12 = por %p2149_p11, %p91_p10  ;;  %p2757_p1 = scmp.eq.s32.totalorder %s1978_s1, 0 }
  0x50   : > { %p2230_p9 = por %p2754_p7, %p85_p8  ;;  %s549_s27 = sand.u32 1, %s1962_s29  }
  0x51   : > { %s2756_s17 = scalar_select %p2236_p12, 1, 0 }
  0x52   : > { %p87_p2 = por %p85_p8, %p2757_p1  ;;  %s1445_s18 = sshll.u32 %s549_s27, 1 }
  0x53   : > { %s1446_s11 = sshll.u32 %s73_s30, 1  ;;  %s2758_s20 = sld [smem:[#allocation37_spill]] }
  0x54   : > { %s551_s13 = scalar_lea.vmem [#allocation9], %s1445_s18  ;;  %p2759_p3 = scmp.lt.s32.totalorder %s1978_s1, 8 }
  0x55   : > { %s560_s19 = sshll.u32 %s551_s13, 4  ;;  %s548_s12 = scalar_lea.sflag [#allocation10], %s547_s26  ;;  %s561_s19 = int_to_ptr.vmem [resolvable:$true] %s560_s19 }
  0x56   : > { %p2248_p5 = pnand %p2759_p3, %p87_p2 }
  0x58   : > { %p1698_p8 = pneg %p2248_p5 }
  0x59   : > { %s556_s6 = scalar_lea.hbm %s2758_s20, %s1446_s11  ;;  %s1701_s13 = scalar_lea.hbm %s2758_s20, 16 }
  0x5a   : > { %s558_s15 = sshll.u32 %s556_s6, 4  ;;  %s559_s15 = int_to_ptr.hbm [resolvable:$true] %s558_s15 }
  0x5b   : > { %s1694_s10 = sshra.s32 %s559_s15, 4  ;;  %s1695_s10 = int_to_ptr.hbm [resolvable:$true] %s1694_s10 }
  0x5c   : > { %s1696_s27 = scalar_lea.hbm %s1695_s10, 2  ;;  %p1702_p2 = scmp.lt.s32.totalorder %s1695_s10, %s2758_s20 }
  0x5d   : > { %p1697_p11 = scmp.ne.s32.totalorder %s1695_s10, %s1696_s27  ;;  %p1703_p1 = scmp.lt.s32.totalorder %s1701_s13, %s1696_s27 }
  0x5f   : > { %p1699_p10 = pnand %p1698_p8, %p1697_p11  ;;  %p1704_p3 = por %p1703_p1, %p1702_p2 }
  0x61   : > { %p1700_p7 = pneg %p1699_p10 }
  0x63   : > { %p1705_p12 = pnand %p1704_p3, %p1700_p7 }
  0x65   : > { %1708 = shalt.err (!%p1705_p12)
}
  0x66   : > { %1519 = dma.hbm_to_vmem [thread:$0]  (!%p2248_p5), %s559_s15, 32, %s561_s19, %s548_s12  }
  0x67   : > { %569 = sbr.rel (%p2131_p4) target bundleno = 886 (0x376), region = 72  ;;  %s2265_s26 = sand.u32 (!%p2131_p4), 1, %s1970_s0  }
  0x68   : > { %s1448_s25 = sshll.u32 (!%p2131_p4), %s2265_s26, 1  ;;  %s572_s6 = scalar_lea.sflag (!%p2131_p4), [#allocation7], %s2265_s26 }
  0x69   : > { %s2269_s30 = scalar_lea.vmem (!%p2131_p4), [#allocation6], %s1448_s25 }
  0x6c   : > { %1921 = dma.done.wait (%p2161_p13), %s572_s6, 32  }
  0x6d   : > { %1923 = vsyncadd (%p2161_p13), %s572_s6, 4294967264  ;;  %s2717_s15 = sand.u32 1, %s2125_s2   ;;  %s583_s19 = sand.u32 1, %s1958_s28  }
  0x6e   : > { %s2277_s23 = sshll.u32 %s583_s19, 1  ;;  %s582_s10 = scalar_lea.sflag [#allocation10], %s2717_s15 }
  0x6f   : > { %s585_s12 = scalar_lea.vmem [#allocation9], %s2277_s23 }
  0x70   : > { %1925 = dma.done.wait (%p2223_p6), %s582_s10, 32  }
  0x71   : > { %1927 = vsyncadd (%p2223_p6), %s582_s10, 4294967264  ;;  %p2761_p4 = scmp.eq.s32.totalorder %s2125_s2, 0 }
  0x73   : > { %1929 = dma.done.wait (%p2761_p4), [#allocation10], 1024   ;;  %p2762_p13 = pmov %p2761_p4 }
  0x74   : > { %s2290_s22 = scalar_lea.vmem [#allocation12], %s1448_s25  ;;  %s2718_s24 = scalar_lea.vmem [#allocation13], %s2277_s23 }
  0x75   : > { %1931 = vsyncadd (%p2762_p13), [#allocation10], 4294966272  ;;  %p2763_p12 = scmp.ne.s32.totalorder %s2125_s2, 0 }
  0x77   : > { %659 = sbr.rel (%p2763_p12) target bundleno = 129 (0x81), region = 88 }
  0x7c   : > { %vm660_vm0 = vcmask 517120   ;;  %v1983_v0 = vmov 0.0  }
  0x7d   : > { %661 = vst.msk [vmem:[#allocation2] sm:$0x3] %vm660_vm0, %v1983_v0 }
  0x7e   : > { %662 = vst.msk [vmem:[#allocation3] sm:$0x3] %vm660_vm0, %v1983_v0 }
  0x7f   : > { %663 = vst.msk [vmem:[#allocation4] sm:$0x3] %vm660_vm0, %v1983_v0 }
  0x80   : > { %664 = vst.msk [vmem:[#allocation5] sm:$0x3] %vm660_vm0, %v1983_v0 }
  0x81 PF: > { %s2764_s4 = sld [smem:[#allocation40_spill]]  ;;  %v896_v11 = vld [vmem:[%s2687_s7 + $0x70] sm:$0xff]  ;;  %v668_v14 = vld [vmem:[%s2269_s30] sm:$0x3]  ;;  %vm737_vm1 = vcmask 261120   ;;  %v894_v15 = vld [vmem:[%s2687_s7 + $0x60] sm:$0xff] }
  0x82   : > { %s2765_s3 = sld [smem:[#allocation39_spill]]  ;;  %v892_v19 = vld [vmem:[%s2687_s7 + $0x50] sm:$0xff]  ;;  %v897_v22 = vld [vmem:[%s2687_s7 + $0x78] sm:$0xff]  ;;  %v890_v23 = vld [vmem:[%s2687_s7 + $0x40] sm:$0xff]  ;;  %vm693_vm2 = vcmask 523264   ;;  %s1984_s21 = smov 64  }
  0x83   : > { %v895_v26 = vld [vmem:[%s2687_s7 + $0x68] sm:$0xff]  ;;  %v888_v28 = vld [vmem:[%s2687_s7 + $0x30] sm:$0xff]  ;;  %v893_v30 = vld [vmem:[%s2687_s7 + $0x58] sm:$0xff]  ;;  %s2766_s5 = sld [smem:[#allocation41_spill]]  ;;  %s870_s10 = ssub.s32 7, %s2125_s2 }
  0x84   : > { %v2372_v27 = vld [vmem:[#allocation2] sm:$0x3]  ;;  %v891_v34 = vld [vmem:[%s2687_s7 + $0x48] sm:$0xff]  ;;  %v884_v35 = vld [vmem:[%s2687_s7 + $0x10] sm:$0xff]  ;;  %s2767_s18 = sld [smem:[#allocation38_spill]]  ;;  %p1466_p6 = scmp.ne.s32.totalorder %s2125_s2, 7 }
  0x85   : > { %v886_v31 = vld [vmem:[%s2687_s7 + $0x20] sm:$0xff]  ;;  %v878_v36 = vld [vmem:[#allocation11 + $0x20] sm:$0xff]  ;;  %v889_v39 = vld [vmem:[%s2687_s7 + $0x38] sm:$0xff]  ;;  %s1986_s11 = smov (!%p1466_p6), 64   ;;  %s2768_s27 = sld [smem:[#allocation44_spill]] (!%p1466_p6) }
  0x86   : > { %v880_v32 = vld [vmem:[#allocation11 + $0x30] sm:$0xff]  ;;  %v887_v43 = vld [vmem:[%s2687_s7 + $0x28] sm:$0xff]  ;;  %v874_v44 = vld [vmem:[#allocation11] sm:$0xff]  ;;  %s2770_s14 = sld [smem:[#allocation43_spill]] (!%p1466_p6) }
  0x87   : > { %v691_v1 = vld [vmem:[%s2764_s4 + $0x70] sm:$0xff]  ;;  %v689_v3 = vld [vmem:[%s2764_s4 + $0x60] sm:$0xff]  ;;  %v692_v16 = vld [vmem:[%s2764_s4 + $0x78] sm:$0xff]  ;;  %s2771_s30 = sld [smem:[#allocation45_spill]] (!%p1466_p6) }
  0x88   : > { %v675_v2 = vld [vmem:[%s2765_s3 + $0x30] sm:$0xff]  ;;  %705 = vmatpush.msra.mxu0 %v691_v1  ;;  %v673_v4 = vld [vmem:[%s2765_s3 + $0x20] sm:$0xff]  ;;  %v676_v7 = vld [vmem:[%s2765_s3 + $0x38] sm:$0xff]  ;;  %725 = vmatpush.msra.mxu1 %v692_v16  ;;  %v841_v16 = vstv %s2125_s2 }
  0x89   : > { %753 = vmatpush.msra.mxu2 %v675_v2  ;;  %v687_v5 = vld [vmem:[%s2764_s4 + $0x50] sm:$0xff]  ;;  %v685_v8 = vld [vmem:[%s2764_s4 + $0x40] sm:$0xff]  ;;  %773 = vmatpush.msra.mxu3 %v676_v7  ;;  %v674_v10 = vld [vmem:[%s2765_s3 + $0x28] sm:$0xff] }
  0x8a   : > { %v671_v6 = vld [vmem:[%s2765_s3 + $0x10] sm:$0xff]  ;;  %706 = vmatpush.msra.mxu0 %v689_v3  ;;  %v669_v9 = vld [vmem:[%s2765_s3] sm:$0xff]  ;;  %v672_v12 = vld [vmem:[%s2765_s3 + $0x18] sm:$0xff] }
  0x8b   : > { %754 = vmatpush.msra.mxu2 %v673_v4  ;;  %v683_v13 = vld [vmem:[%s2764_s4 + $0x30] sm:$0xff]  ;;  %774 = vmatpush.msra.mxu3 %v674_v10  ;;  %v681_v17 = vld [vmem:[%s2764_s4 + $0x20] sm:$0xff]  ;;  %v670_v18 = vld [vmem:[%s2765_s3 + $0x8] sm:$0xff] }
  0x8c   : > { %707 = vmatpush.msra.mxu0 %v687_v5  ;;  %v690_v20 = vld [vmem:[%s2764_s4 + $0x68] sm:$0xff]  ;;  %v679_v21 = vld [vmem:[%s2764_s4 + $0x10] sm:$0xff]  ;;  %v688_v24 = vld [vmem:[%s2764_s4 + $0x58] sm:$0xff] }
  0x8d   : > { %755 = vmatpush.msra.mxu2 %v671_v6  ;;  %775 = vmatpush.msra.mxu3 %v672_v12  ;;  %v677_v25 = vld [vmem:[%s2764_s4] sm:$0xff]  ;;  %v686_v29 = vld [vmem:[%s2764_s4 + $0x48] sm:$0xff]  ;;  %v684_v33 = vld [vmem:[%s2764_s4 + $0x38] sm:$0xff] }
  0x8e   : > { %708 = vmatpush.msra.mxu0 %v685_v8  ;;  %726 = vmatpush.msra.mxu1 %v690_v20  ;;  %v682_v37 = vld [vmem:[%s2764_s4 + $0x28] sm:$0xff]  ;;  %v882_v38 = vld [vmem:[%s2687_s7] sm:$0xff]  ;;  %v680_v42 = vld [vmem:[%s2764_s4 + $0x18] sm:$0xff] }
  0x8f   : > { %756 = vmatpush.msra.mxu2 %v669_v9  ;;  %776 = vmatpush.msra.mxu3 %v670_v18  ;;  %v2407_v40 = vld [vmem:[#allocation4] sm:$0x3]  ;;  %v667_v45 = vld [vmem:[#allocation3] sm:$0x3]  ;;  %v678_v46 = vld [vmem:[%s2764_s4 + $0x8] sm:$0xff] }
  0x90   : > { %709 = vmatpush.msra.mxu0 %v683_v13  ;;  %1456 = vmatmul.msk.f32.vlgmr.msra.gmra.mxu2 %vm737_vm1, %v668_v14  ;;  %v876_v41 = vld [vmem:[#allocation11 + $0x10] sm:$0xff]  ;;  %v885_v47 = vld [vmem:[%s2687_s7 + $0x18] sm:$0xff]  ;;  %v873_v48 = vld [vmem:[%s585_s12] sm:$0x3] }
  0x91   : > { %909 = vmatpush.msrb.mxu2 %v896_v11  ;;  %929 = vmatpush.msrb.mxu3 %v897_v22  ;;  %v883_v49 = vld [vmem:[%s2687_s7 + $0x8] sm:$0xff]  ;;  %v879_v51 = vld [vmem:[#allocation11 + $0x28] sm:$0xff]  ;;  %v872_v53 = vld [vmem:[#allocation5] sm:$0x3]  ;;  %v1985_v11 = vmov 0  }
  0x92   : > { %710 = vmatpush.msra.mxu0 %v681_v17  ;;  %727 = vmatpush.msra.mxu1 %v688_v24  ;;  %v881_v50 = vld [vmem:[#allocation11 + $0x38] sm:$0xff]  ;;  %v875_v54 = vld [vmem:[#allocation11 + $0x8] sm:$0xff]  ;;  %v781_v55 = vld [vmem:[%s2766_s5] sm:$0x3] }
  0x93   : > { %910 = vmatpush.msrb.mxu2 %v894_v15  ;;  %930 = vmatpush.msrb.mxu3 %v895_v26  ;;  %v877_v52 = vld [vmem:[#allocation11 + $0x18] sm:$0xff]  ;;  %v783_v57 = vperm.slane %v781_v55, 0  ;;  %v984_v62 = vld [vmem:[%s2688_s8] sm:$0x3]  ;;  %v784_v9 = vperm.slane %v781_v55, 1 }
  0x94   : > { %711 = vmatpush.msra.mxu0 %v679_v21  ;;  %728 = vmatpush.msra.mxu1 %v686_v29  ;;  %v986_v0 = vperm.slane %v984_v62, 0  ;;  %v665_v15 = vld [vmem:[%s2767_s18] sm:$0x3]  ;;  %v1044_v21 = vstv %s870_s10  ;;  %s2769_s18 = smov (!%p1466_p6), %s2768_s27 }
  0x95   : > { %911 = vmatpush.msrb.mxu2 %v892_v19  ;;  %931 = vmatpush.msrb.mxu3 %v893_v30  ;;  %vm842_vm3 = vcmp.lt.s32.totalorder %v841_v16, %v665_v15  ;;  %vm1045_vm6 = vcmp.lt.s32.totalorder %v1044_v21, %v665_v15 }
  0x96   : > { %712 = vmatpush.msra.mxu0 %v677_v25  ;;  %729 = vmatpush.msra.mxu1 %v684_v33  ;;  %v843_v20 = vsel %vm842_vm3, 1, %v1985_v11 }
  0x97   : > { %912 = vmatpush.msrb.mxu2 %v890_v23  ;;  %1454 = vmatmul.msk.f32.vlgmr.msra.gmra.mxu0 %vm693_vm2, %v2372_v27 }
  0x98   : > { %956 = vmatpush.msrb.mxu0 %v880_v32  ;;  %932 = vmatpush.msrb.mxu3 %v891_v34  ;;  %v1046_v34 = vsel %vm1045_vm6, 1, %v1985_v11 }
  0x99   : > { %913 = vmatpush.msrb.mxu2 %v888_v28  ;;  %1457 = vmatmul.msk.f32.vlgmr.msra.gmra.mxu3 %vm737_vm1, %v668_v14 }
  0x9a   : > { %957 = vmatpush.msrb.mxu0 %v878_v36  ;;  %730 = vmatpush.msra.mxu1 %v682_v37 }
  0x9b   : > { %914 = vmatpush.msrb.mxu2 %v886_v31  ;;  %933 = vmatpush.msrb.mxu3 %v889_v39  ;;  %v987_v31 = vperm.slane %v984_v62, 1 }
  0x9c   : > { %958 = vmatpush.msrb.mxu0 %v876_v41  ;;  %731 = vmatpush.msra.mxu1 %v680_v42 }
  0x9d   : > { %915 = vmatpush.msrb.mxu2 %v884_v35  ;;  %934 = vmatpush.msrb.mxu3 %v887_v43 }
  0x9e   : > { %959 = vmatpush.msrb.mxu0 %v874_v44  ;;  %829 = vrot.lane.b32.xlu0 %v667_v45, %s1984_s21 }
  0x9f   : > { %916 = vmatpush.msrb.mxu2 %v882_v38  ;;  %732 = vmatpush.msra.mxu1 %v678_v46 }
  0xa0   : > { %1460 = vmatmul.msk.f32.vlgmr.msrb.gmra.mxu2 %vm693_vm2, %v2407_v40  ;;  %935 = vmatpush.msrb.mxu3 %v885_v47 }
  0xa1   : > { %1455 = vmatmul.msk.f32.vlgmr.msra.gmra.mxu1 %vm693_vm2, %v2372_v27  ;;  %1462 = vmatmul.msk.f32.vlgmr.msrb.gmra.mxu0 %vm737_vm1, %v873_v48 }
  0xa2   : > { %936 = vmatpush.msrb.mxu3 %v883_v49  ;;  %976 = vmatpush.msrb.mxu1 %v881_v50 }
  0xa3   : > { %1461 = vmatmul.msk.f32.vlgmr.msrb.gmra.mxu3 %vm693_vm2, %v2407_v40  ;;  %1606 = vset.pattern.permute.xlu2 %v1985_v11 }
  0xa4   : > { %977 = vmatpush.msrb.mxu1 %v879_v51  ;;  %1607 = vset.pattern.permute.xlu0 %v1985_v11 }
  0xa5   : > { %845 = vperm.xlu2 %1606, %v843_v20  }
  0xa6   : > { %978 = vmatpush.msrb.mxu1 %v877_v52  ;;  %1032 = vrot.lane.b32.xlu0 %v872_v53, %s1984_s21 }
  0xa8   : > { %979 = vmatpush.msrb.mxu1 %v875_v54 }
  0xa9   : > { %1463 = vmatmul.msk.f32.vlgmr.msrb.gmra.mxu1 %vm737_vm1, %v873_v48 }
  0xad   : > { %1048 = vperm.xlu2 %1606, %v1046_v34  }
  0xae   : > { %848 = vrot.lane.b32.xlu0 %v2372_v27, %s1984_s21 }
 0x113   : > { %v758_v56 = vpop.f32.mrf.mxu2 }
 0x114   : > { %v714_v58 = vpop.f32.mrf.mxu0 }
 0x115   : > { %v759_v59 = vadd.f32 %v758_v56, %v714_v58  ;;  %v830_v58 = vpop.permute.xlu0 %829 }
 0x117   : > { %v787_v60 = vadd.f32 %v783_v57, %v759_v59 }
 0x119   : > { %v1458_v61 = vmul.f32 -1.442695, %v787_v60  ;;  %v846_v60 = vpop.permute.xlu2 %845 }
 0x11a   : > { %vm847_vm13 = vcmp.eq.s32.totalorder %v846_v60, 1 }
 0x11b   : > { %1608 = vpow2.f32 %v1458_v61 }
 0x11c   : > { %v778_v6 = vpop.f32.mrf.mxu3 }
 0x11e   : > { %v961_v63 = vpop.f32.mrf.mxu0  ;;  %v734_v5 = vpop.f32.mrf.mxu1 }
 0x11f   : > { %v779_v8 = vadd.f32 %v778_v6, %v734_v5 }
 0x121   : > { %v1609_v1 = vpop.eup %1608  ;;  %v788_v13 = vadd.f32 %v784_v9, %v779_v8 }
 0x122   : > { %v792_v3 = vadd.f32 1.0, %v1609_v1 }
 0x123   : > { %v918_v2 = vpop.f32.mrf.mxu2  ;;  %v1459_v50 = vmul.f32 -1.442695, %v788_v13 }
 0x124   : > { %v962_v4 = vadd.f32 %v961_v63, %v918_v2  ;;  %1610 = vrcp.f32 %v792_v3  ;;  %v804_v19 = vand.u32 2147483648, %v792_v3  ;;  %v802_v24 = vand.u32 2147483647, %v792_v3 }
 0x125   : > { %vm798_vm5 = vweird.f32 %v792_v3 }
 0x126   : > { %v990_v7 = vadd.f32 %v986_v0, %v962_v4  ;;  %v938_v25 = vpop.f32.mrf.mxu3  ;;  %v981_v26 = vpop.f32.mrf.mxu1  ;;  %v805_v29 = vor.u32 1.1754944e-38, %v804_v19  ;;  %vm803_vm8 = vcmp.eq.f32.partialorder %v802_v24, 8.507059e+37 }
 0x127   : > { %v982_v30 = vadd.f32 %v981_v26, %v938_v25 }
 0x128   : > { %v1464_v10 = vmul.f32 -1.442695, %v990_v7 }
 0x129   : > { %v991_v37 = vadd.f32 %v987_v31, %v982_v30 }
 0x12a   : > { %1612 = vpow2.f32 %v1464_v10  ;;  %v1611_v12 = vpop.eup %1610 }
 0x12b   : > { %v794_v14 = vmul.f32 %v1611_v12, %v792_v3  ;;  %1614 = vtanh.f32 %v788_v13  ;;  %vm799_vm4 = vweird.f32 %v1611_v12  ;;  %v1465_v52 = vmul.f32 -1.442695, %v991_v37 }
 0x12c   : > { %vm800_vm7 = vmor %vm798_vm5, %vm799_vm4 }
 0x12d   : > { %v795_v17 = vsub.f32 1.0, %v794_v14  ;;  %v1049_v14 = vpop.permute.xlu2 %1048 }
 0x12e   : > { %vm1050_vm3 = vcmp.eq.s32.totalorder %v1049_v14, 1 }
 0x12f   : > { %v796_v23 = vmul.f32 %v1611_v12, %v795_v17 }
 0x130   : > { %v1613_v18 = vpop.eup %1612 }
 0x131   : > { %v995_v22 = vadd.f32 1.0, %v1613_v18  ;;  %v797_v27 = vadd.f32 %v1611_v12, %v796_v23  ;;  %v1615_v28 = vpop.eup %1614 }
 0x133   : > { %1616 = vrcp.f32 %v995_v22  ;;  %v801_v32 = vsel %vm800_vm7, %v1611_v12, %v797_v27  ;;  %v1007_v41 = vand.u32 2147483648, %v995_v22  ;;  %v1005_v43 = vand.u32 2147483647, %v995_v22 }
 0x134   : > { %v806_v33 = vsel %vm803_vm8, %v805_v29, %v801_v32  ;;  %1618 = vtanh.f32 %v991_v37  ;;  %vm1001_vm10 = vweird.f32 %v995_v22  ;;  %vm856_vm8 = vcmask 517120  }
 0x135   : > { %v833_v35 = vmul.f32 %v1615_v28, %v806_v33  ;;  %v1008_v46 = vor.u32 1.1754944e-38, %v1007_v41  ;;  %vm1006_vm12 = vcmp.eq.f32.partialorder %v1005_v43, 8.507059e+37  ;;  %1620 = vpow2.f32 %v1459_v50 }
 0x136   : > { %1622 = vpow2.f32 %v1465_v52  ;;  %v832_v62 = vmul.f32 %v830_v58, %v806_v33 }
 0x137   : > { %835 = vrot.lane.b32.xlu1 %v833_v35, %s1984_s21 }
 0x139   : > { %v1617_v36 = vpop.eup %1616 }
 0x13a   : > { %v997_v38 = vmul.f32 %v1617_v36, %v995_v22  ;;  %vm1002_vm9 = vweird.f32 %v1617_v36  ;;  %v1619_v45 = vpop.eup %1618 }
 0x13b   : > { %vm1003_vm11 = vmor %vm1001_vm10, %vm1002_vm9  ;;  %v1621_v51 = vpop.eup %1620 }
 0x13c   : > { %v998_v39 = vsub.f32 1.0, %v997_v38  ;;  %v812_v53 = vadd.f32 1.0, %v1621_v51  ;;  %v1623_v54 = vpop.eup %1622 }
 0x13d   : > { %v1015_v56 = vadd.f32 1.0, %v1623_v54 }
 0x13e   : > { %v999_v42 = vmul.f32 %v1617_v36, %v998_v39  ;;  %1624 = vrcp.f32 %v812_v53  ;;  %vm818_vm14 = vweird.f32 %v812_v53  ;;  %v824_v2 = vand.u32 2147483648, %v812_v53 }
 0x13f   : > { %1626 = vrcp.f32 %v1015_v56  ;;  %v822_v4 = vand.u32 2147483647, %v812_v53  ;;  %vm1021_vm4 = vweird.f32 %v1015_v56  ;;  %v1027_v21 = vand.u32 2147483648, %v1015_v56 }
 0x140   : > { %v1000_v44 = vadd.f32 %v1617_v36, %v999_v42  ;;  %v825_v7 = vor.u32 1.1754944e-38, %v824_v2  ;;  %v1025_v23 = vand.u32 2147483647, %v1015_v56 }
 0x141   : > { %vm823_vm1 = vcmp.eq.f32.partialorder %v822_v4, 8.507059e+37  ;;  %v1028_v25 = vor.u32 1.1754944e-38, %v1027_v21 }
 0x142   : > { %v1004_v47 = vsel %vm1003_vm11, %v1617_v36, %v1000_v44  ;;  %vm1026_vm7 = vcmp.eq.f32.partialorder %v1025_v23, 8.507059e+37 }
 0x143   : > { %v1009_v48 = vsel %vm1006_vm12, %v1008_v46, %v1004_v47 }
 0x144   : > { %v1036_v49 = vmul.f32 %v1619_v45, %v1009_v48  ;;  %v1625_v55 = vpop.eup %1624 }
 0x145   : > { %v814_v57 = vmul.f32 %v1625_v55, %v812_v53  ;;  %v1627_v63 = vpop.eup %1626  ;;  %vm819_vm15 = vweird.f32 %v1625_v55 }
 0x146   : > { %1038 = vrot.lane.b32.xlu1 %v1036_v49, %s1984_s21  ;;  %vm820_vm0 = vmor %vm818_vm14, %vm819_vm15  ;;  %v1017_v6 = vmul.f32 %v1627_v63, %v1015_v56  ;;  %vm1022_vm5 = vweird.f32 %v1627_v63 }
 0x147   : > { %v815_v59 = vsub.f32 1.0, %v814_v57  ;;  %vm1023_vm6 = vmor %vm1021_vm4, %vm1022_vm5 }
 0x148   : > { %v1018_v9 = vsub.f32 1.0, %v1017_v6 }
 0x149   : > { %v816_v61 = vmul.f32 %v1625_v55, %v815_v59 }
 0x14a   : > { %v1019_v15 = vmul.f32 %v1627_v63, %v1018_v9 }
 0x14b   : > { %v817_v3 = vadd.f32 %v1625_v55, %v816_v61 }
 0x14c   : > { %v1020_v22 = vadd.f32 %v1627_v63, %v1019_v15 }
 0x14d   : > { %v821_v8 = vsel %vm820_vm0, %v1625_v55, %v817_v3 }
 0x14e   : > { %1051 = vrot.lane.b32.xlu1 %v2407_v40, %s1984_s21  ;;  %v1033_v40 = vpop.permute.xlu0 %1032  ;;  %v826_v12 = vsel %vm823_vm1, %v825_v7, %v821_v8  ;;  %v1024_v26 = vsel %vm1023_vm6, %v1627_v63, %v1020_v22 }
 0x14f   : > { %v1035_v16 = vmul.f32 %v1033_v40, %v1009_v48  ;;  %v1029_v29 = vsel %vm1026_vm7, %v1028_v25, %v1024_v26 }
 0x156   : > { %v849_v11 = vpop.permute.xlu0 %848 }
 0x1a9   : > { %v836_v0 = vpop.permute.xlu1 %835 }
 0x1aa   : > { %v838_v1 = vadd.f32 %v836_v0, %v832_v62 }
 0x1ac   : > { %1628 = vtanh.f32 %v838_v1  ;;  %v858_v5 = vsel %vm847_vm13, %v838_v1, %v830_v58 }
 0x1ad   : > { %860 = vrot.lane.b32.xlu0 %v858_v5, %s1984_s21 }
 0x1b2   : > { %v1629_v10 = vpop.eup %1628 }
 0x1b3   : > { %v840_v13 = vmul.f32 %v1629_v10, %v826_v12 }
 0x1b5   : > { %v864_v17 = vsel %vm847_vm13, %v840_v13, 0.0  ;;  %v851_v18 = vsel %vm847_vm13, %v840_v13, %v849_v11 }
 0x1b6   : > { %866 = vrot.lane.b32.xlu1 %v864_v17, %s1984_s21  ;;  %853 = vrot.lane.b32.xlu2 %v851_v18, %s1984_s21 }
 0x1b8   : > { %v1039_v19 = vpop.permute.xlu1 %1038 }
 0x1b9   : > { %v1041_v20 = vadd.f32 %v1039_v19, %v1035_v16 }
 0x1bb   : > { %1630 = vtanh.f32 %v1041_v20  ;;  %v1060_v24 = vsel %vm1050_vm3, %v1041_v20, %v1033_v40 }
 0x1bc   : > { %1062 = vrot.lane.b32.xlu0 %v1060_v24, %s1984_s21 }
 0x1c0   : > { %v1052_v28 = vpop.permute.xlu1 %1051 }
 0x1c1   : > { %v1631_v27 = vpop.eup %1630 }
 0x1c2   : > { %v1043_v30 = vmul.f32 %v1631_v27, %v1029_v29 }
 0x1c4   : > { %v1066_v31 = vsel %vm1050_vm3, %v1043_v30, 0.0  ;;  %v1054_v32 = vsel %vm1050_vm3, %v1043_v30, %v1052_v28 }
 0x1c5   : > { %1068 = vrot.lane.b32.xlu1 %v1066_v31, %s1984_s21  ;;  %1056 = vrot.lane.b32.xlu2 %v1054_v32, %s1984_s21 }
 0x210   : > { %v854_v33 = vpop.permute.xlu2 %853 }
 0x211   : > { %857 = vst.msk [vmem:[#allocation2] sm:$0x3] %vm856_vm8, %v854_v33 }
 0x21f   : > { %v1057_v34 = vpop.permute.xlu2 %1056  ;;  %v861_v35 = vpop.permute.xlu0 %860 }
 0x220   : > { %1059 = vst.msk [vmem:[#allocation4] sm:$0x3] %vm856_vm8, %v1057_v34 }
 0x221   : > { %863 = vst.msk [vmem:[#allocation3] sm:$0x3] %vm856_vm8, %v861_v35 }
 0x228   : > { %v867_v36 = vpop.permute.xlu1 %866 }
 0x229   : > { %869 = vst.msk [vmem:[%s2290_s22] sm:$0x3] %vm856_vm8, %v867_v36 }
 0x22e   : > { %v1063_v37 = vpop.permute.xlu0 %1062 }
 0x22f   : > { %1065 = vst.msk [vmem:[#allocation5] sm:$0x3] %vm856_vm8, %v1063_v37 }
 0x234   : > { %1075 = sbr.rel (%p1466_p6) target bundleno = 823 (0x337), region = 92 }
 0x237   : > { %v1069_v38 = vpop.permute.xlu1 %1068 }
 0x238   : > { %1071 = vst.msk [vmem:[%s2718_s24] sm:$0x3] %vm856_vm8, %v1069_v38 }
 0x239   : > { %v1077_v39 = vld [vmem:[#allocation4] sm:$0x3]  ;;  %v1107_v41 = vld [vmem:[%s2689_s9 + $0x78] sm:$0xff]  ;;  %v1106_v42 = vld [vmem:[%s2689_s9 + $0x70] sm:$0xff] }
 0x23a   : > { %1079 = vrot.lane.b32.xlu0 %v1077_v39, %s1986_s11  ;;  %1112 = vmatpush.msra.mxu0 %v1107_v41  ;;  %v1105_v43 = vld [vmem:[%s2689_s9 + $0x68] sm:$0xff]  ;;  %v1148_v44 = vld [vmem:[%s2768_s27 + $0x78] sm:$0xff]  ;;  %v1147_v45 = vld [vmem:[%s2769_s18 + $0x70] sm:$0xff] }
 0x23b   : > { %1153 = vmatpush.msra.mxu1 %v1148_v44  ;;  %v1104_v46 = vld [vmem:[%s2689_s9 + $0x60] sm:$0xff]  ;;  %v1146_v47 = vld [vmem:[%s2769_s18 + $0x68] sm:$0xff]  ;;  %v1103_v49 = vld [vmem:[%s2689_s9 + $0x58] sm:$0xff] }
 0x23c   : > { %1113 = vmatpush.msra.mxu0 %v1106_v42  ;;  %v1084_v48 = vld [vmem:[#allocation5] sm:$0x3]  ;;  %v1102_v51 = vld [vmem:[%s2689_s9 + $0x50] sm:$0xff]  ;;  %v1144_v52 = vld [vmem:[%s2769_s18 + $0x58] sm:$0xff] }
 0x23d   : > { %1154 = vmatpush.msra.mxu1 %v1147_v45  ;;  %v1145_v50 = vld [vmem:[%s2769_s18 + $0x60] sm:$0xff]  ;;  %v1101_v53 = vld [vmem:[%s2689_s9 + $0x48] sm:$0xff]  ;;  %v1143_v54 = vld [vmem:[%s2769_s18 + $0x50] sm:$0xff] }
 0x23e   : > { %1114 = vmatpush.msra.mxu0 %v1105_v43  ;;  %v1100_v55 = vld [vmem:[%s2689_s9 + $0x40] sm:$0xff]  ;;  %v1142_v56 = vld [vmem:[%s2769_s18 + $0x48] sm:$0xff]  ;;  %v1099_v57 = vld [vmem:[%s2689_s9 + $0x38] sm:$0xff] }
 0x23f   : > { %1155 = vmatpush.msra.mxu1 %v1146_v47  ;;  %v1141_v58 = vld [vmem:[%s2769_s18 + $0x40] sm:$0xff]  ;;  %v1098_v59 = vld [vmem:[%s2689_s9 + $0x30] sm:$0xff]  ;;  %v1140_v60 = vld [vmem:[%s2769_s18 + $0x38] sm:$0xff] }
 0x240   : > { %1115 = vmatpush.msra.mxu0 %v1104_v46  ;;  %v1097_v61 = vld [vmem:[%s2689_s9 + $0x28] sm:$0xff]  ;;  %v1139_v62 = vld [vmem:[%s2769_s18 + $0x30] sm:$0xff]  ;;  %v1096_v63 = vld [vmem:[%s2689_s9 + $0x20] sm:$0xff] }
 0x241   : > { %1156 = vmatpush.msra.mxu1 %v1145_v50  ;;  %v1138_v0 = vld [vmem:[%s2769_s18 + $0x28] sm:$0xff]  ;;  %v1095_v40 = vld [vmem:[%s2689_s9 + $0x18] sm:$0xff]  ;;  %v1094_v1 = vld [vmem:[%s2689_s9 + $0x10] sm:$0xff] }
 0x242   : > { %1086 = vrot.lane.b32.xlu0 %v1084_v48, %s1986_s11  ;;  %1116 = vmatpush.msra.mxu0 %v1103_v49  ;;  %v1093_v2 = vld [vmem:[%s2689_s9 + $0x8] sm:$0xff]  ;;  %v1092_v3 = vld [vmem:[%s2689_s9] sm:$0xff]  ;;  %v1136_v5 = vld [vmem:[%s2769_s18 + $0x18] sm:$0xff] }
 0x243   : > { %1157 = vmatpush.msra.mxu1 %v1144_v52  ;;  %v1137_v4 = vld [vmem:[%s2769_s18 + $0x20] sm:$0xff]  ;;  %v1135_v6 = vld [vmem:[%s2769_s18 + $0x10] sm:$0xff]  ;;  %v1134_v7 = vld [vmem:[%s2769_s18 + $0x8] sm:$0xff] }
 0x244   : > { %1117 = vmatpush.msra.mxu0 %v1102_v51  ;;  %v1133_v8 = vld [vmem:[%s2769_s18] sm:$0xff] }
 0x245   : > { %1158 = vmatpush.msra.mxu1 %v1143_v54  ;;  %v1076_v9 = vld [vmem:[#allocation2] sm:$0x3]  ;;  %v1083_v12 = vld [vmem:[#allocation3] sm:$0x3] }
 0x246   : > { %1118 = vmatpush.msra.mxu0 %v1101_v53  ;;  %v1632_v15 = vld [vmem:[%s2770_s14] ss:$0 sm:$0xff] }
 0x247   : > { %1159 = vmatpush.msra.mxu1 %v1142_v56  ;;  %v1633_v18 = vld [vmem:[%s2771_s30] ss:$0 sm:$0xff] }
 0x248   : > { %1119 = vmatpush.msra.mxu0 %v1100_v55 }
 0x249   : > { %1160 = vmatpush.msra.mxu1 %v1141_v58 }
 0x24a   : > { %1120 = vmatpush.msra.mxu0 %v1099_v57 }
 0x24b   : > { %1161 = vmatpush.msra.mxu1 %v1140_v60 }
 0x24c   : > { %1121 = vmatpush.msra.mxu0 %v1098_v59 }
 0x24d   : > { %1162 = vmatpush.msra.mxu1 %v1139_v62 }
 0x24e   : > { %1122 = vmatpush.msra.mxu0 %v1097_v61 }
 0x24f   : > { %1163 = vmatpush.msra.mxu1 %v1138_v0 }
 0x250   : > { %1123 = vmatpush.msra.mxu0 %v1096_v63 }
 0x251   : > { %1164 = vmatpush.msra.mxu1 %v1137_v4 }
 0x252   : > { %1124 = vmatpush.msra.mxu0 %v1095_v40 }
 0x253   : > { %1165 = vmatpush.msra.mxu1 %v1136_v5 }
 0x254   : > { %1125 = vmatpush.msra.mxu0 %v1094_v1 }
 0x255   : > { %1166 = vmatpush.msra.mxu1 %v1135_v6 }
 0x256   : > { %1126 = vmatpush.msra.mxu0 %v1093_v2 }
 0x257   : > { %1167 = vmatpush.msra.mxu1 %v1134_v7 }
 0x258   : > { %1127 = vmatpush.msra.mxu0 %v1092_v3 }
 0x259   : > { %1168 = vmatpush.msra.mxu1 %v1133_v8 }
 0x2ac   : > { %v1080_v10 = vpop.permute.xlu0 %1079 }
 0x2ad   : > { %v1082_v11 = vsel %vm693_vm2, %v1076_v9, %v1080_v10 }
 0x2ae   : > { %1090 = vst [vmem:[#allocation15] sm:$0x3] %v1082_v11  ;;  %1128 = vmatmul.f32.vlgmr.msra.gmra.mxu0 %v1082_v11 }
 0x2b4   : > { %v1087_v13 = vpop.permute.xlu0 %1086 }
 0x2b5   : > { %v1089_v14 = vsel %vm693_vm2, %v1083_v12, %v1087_v13 }
 0x2b6   : > { %1091 = vst [vmem:[#allocation16] sm:$0x3] %v1089_v14  ;;  %1169 = vmatmul.f32.vlgmr.msra.gmra.mxu1 %v1089_v14 }
 0x32b   : > { %v1129_v16 = vpop.f32.mrf.mxu0 }
 0x32c   : > { %v1130_v17 = vadd.f32 %v1632_v15, %v1129_v16 }
 0x32e   : > { %1132 = vst.msk [vmem:[#allocation18] sm:$0x3] %vm856_vm8, %v1130_v17 }
 0x333   : > { %v1170_v19 = vpop.f32.mrf.mxu1 }
 0x334   : > { %v1171_v20 = vadd.f32 %v1633_v18, %v1170_v19 }
 0x336   : > { %1173 = vst.msk [vmem:[#allocation19] sm:$0x3] %vm856_vm8, %v1171_v20 }
 0x337 PF: > { %s1470_s13 = sshll.u32 %s870_s10, 1  ;;  %s2772_s25 = sld [smem:[#allocation47_spill]] }
 0x338   : > { %s2773_s19 = scalar_lea.vmem [#allocation13], %s2277_s23  ;;  %s2774_s14 = sand.u32 1, %s2125_s2  }
 0x339   : > { %s1207_s11 = sshll.u32 %s2773_s19, 4  ;;  %s1180_s24 = scalar_lea.sflag [#allocation14], %s2774_s14  ;;  %s1208_s11 = int_to_ptr.vmem [resolvable:$true] %s1207_s11 }
 0x33d   : > { %s1205_s6 = scalar_lea.hbm %s2772_s25, %s1470_s13  ;;  %s1744_s4 = scalar_lea.hbm %s2772_s25, 16 }
 0x33e   : > { %s1209_s15 = sshll.u32 %s1205_s6, 4  ;;  %s1210_s15 = int_to_ptr.hbm [resolvable:$true] %s1209_s15 }
 0x33f   : > { %s1738_s27 = sshra.s32 %s1210_s15, 4  ;;  %s1739_s27 = int_to_ptr.hbm [resolvable:$true] %s1738_s27 }
 0x340   : > { %s1740_s30 = scalar_lea.hbm %s1739_s27, 2  ;;  %p1745_p10 = scmp.lt.s32.totalorder %s1739_s27, %s2772_s25 }
 0x341   : > { %p1741_p5 = scmp.ne.s32.totalorder %s1739_s27, %s1740_s30  ;;  %p1746_p7 = scmp.lt.s32.totalorder %s1744_s4, %s1740_s30 }
 0x343   : > { %p1742_p11 = pnand %p1741_p5, %p2230_p9  ;;  %p1747_p2 = por %p1746_p7, %p1745_p10 }
 0x345   : > { %p1743_p8 = pneg %p1742_p11 }
 0x347   : > { %p1748_p1 = pnand %p1747_p2, %p1743_p8 }
 0x349   : > { %1751 = shalt.err (!%p1748_p1)
}
 0x34a   : > { %1490 = dma.vmem_to_hbm [thread:$0]  (%p2230_p9), %s1208_s11, 32, %s1210_s15, %s1180_s24  }
 0x34b   : > { %s1987_s23 = smov [#allocation16]   ;;  %s2775_s19 = sld [smem:[#allocation49_spill]] }
 0x34c   : > { %s1231_s12 = sshll.u32 %s1987_s23, 4  ;;  %p2777_p3 = scmp.eq.s32.totalorder %s2125_s2, 7  ;;  %s1232_s12 = int_to_ptr.vmem [resolvable:$true] %s1231_s12 }
 0x34d   : > { %s1469_s4 = sshll.u32 %s2125_s2, 1  ;;  %s2778_s16 = sld [smem:[#allocation46_spill]] }
 0x34e   : > { %s1192_s13 = sshll.u32 %s2290_s22, 4  ;;  %s1175_s11 = scalar_lea.sflag [#allocation8], %s2265_s26  ;;  %s1193_s13 = int_to_ptr.vmem [resolvable:$true] %s1192_s13 }
 0x351   : > { %s1233_s10 = sshll.u32 %s2775_s19, 4  ;;  %s1234_s10 = int_to_ptr.hbm [resolvable:$true] %s1233_s10 }
 0x352   : > { %1494 = dma.vmem_to_hbm [thread:$0]  (%p2777_p3), %s1232_s12, 32, %s1234_s10, [#allocation17]  }
 0x353   : > { %s1190_s21 = scalar_lea.hbm %s2778_s16, %s1469_s4  ;;  %s1800_s12 = scalar_lea.hbm %s2778_s16, 16 }
 0x354   : > { %s1194_s5 = sshll.u32 %s1190_s21, 4  ;;  %s1195_s5 = int_to_ptr.hbm [resolvable:$true] %s1194_s5 }
 0x355   : > { %s1794_s15 = sshra.s32 %s1195_s5, 4  ;;  %s1795_s15 = int_to_ptr.hbm [resolvable:$true] %s1794_s15 }
 0x356   : > { %s1796_s24 = scalar_lea.hbm %s1795_s15, 2  ;;  %p1801_p12 = scmp.lt.s32.totalorder %s1795_s15, %s2778_s16 }
 0x357   : > { %p1797_p9 = scmp.ne.s32.totalorder %s1795_s15, %s1796_s24  ;;  %p1802_p6 = scmp.lt.s32.totalorder %s1800_s12, %s1796_s24 }
 0x359   : > { %p1798_p4 = pnand %p1797_p9, %p2167_p0  ;;  %p1803_p5 = por %p1802_p6, %p1801_p12 }
 0x35b   : > { %p1799_p13 = pneg %p1798_p4 }
 0x35d   : > { %p1804_p11 = pnand %p1803_p5, %p1799_p13 }
 0x35f   : > { %1807 = shalt.err (!%p1804_p11)
}
 0x360   : > { %1489 = dma.vmem_to_hbm [thread:$0]  (%p2167_p0), %s1193_s13, 32, %s1195_s5, %s1175_s11  }
 0x361   : > { %s1988_s26 = smov [#allocation15]   ;;  %s2779_s27 = sld [smem:[#allocation48_spill]] }
 0x362   : > { %s1219_s22 = sshll.u32 %s1988_s26, 4  ;;  %p2780_p8 = pmov %p2777_p3  ;;  %s1220_s22 = int_to_ptr.vmem [resolvable:$true] %s1219_s22 }
 0x363   : > { %s2781_s24 = sld [smem:[#allocation50_spill]]  ;;  %s1989_s14 = smov [#allocation18]  }
 0x364   : > { %s1243_s6 = sshll.u32 %s1989_s14, 4  ;;  %p2782_p0 = pmov %p2777_p3  ;;  %s1244_s6 = int_to_ptr.vmem [resolvable:$true] %s1243_s6 }
 0x365   : > { %s1990_s5 = smov [#allocation19]   ;;  %s2783_s3 = sld [smem:[#allocation51_spill]] }
 0x366   : > { %s1255_s13 = sshll.u32 %s1990_s5, 4  ;;  %p2784_p10 = pmov %p2782_p0  ;;  %s1256_s13 = int_to_ptr.vmem [resolvable:$true] %s1255_s13 }
 0x367   : > { %s1221_s30 = sshll.u32 %s2779_s27, 4  ;;  %p2785_p7 = pmov %p2782_p0  ;;  %s1222_s30 = int_to_ptr.hbm [resolvable:$true] %s1221_s30 }
 0x368   : > { %1492 = dma.vmem_to_hbm [thread:$0]  (%p2780_p8), %s1220_s22, 32, %s1222_s30, [#allocation14]  }
 0x369   : > { %s1245_s23 = sshll.u32 %s2781_s24, 4  ;;  %s1246_s23 = int_to_ptr.hbm [resolvable:$true] %s1245_s23 }
 0x36a   : > { %1496 = dma.vmem_to_hbm [thread:$0]  (%p2782_p0), %s1244_s6, 32, %s1246_s23, [#allocation17]  }
 0x36b   : > { %s1257_s19 = sshll.u32 %s2783_s3, 4  ;;  %s1258_s19 = int_to_ptr.hbm [resolvable:$true] %s1257_s19 }
 0x36c   : > { %1498 = dma.vmem_to_hbm [thread:$0]  (%p2784_p10), %s1256_s13, 32, %s1258_s19, [#allocation20]  }
 0x36d   : > { %1933 = dma.done.wait (%p2785_p7), [#allocation14], 32   ;;  %p2786_p2 = pmov %p2782_p0 }
 0x36e   : > { %p2787_p1 = pmov %p2782_p0 }
 0x36f   : > { %1935 = vsyncadd (%p2786_p2), [#allocation14], 4294967264 }
 0x370   : > { %1937 = dma.done.wait (%p2787_p1), [#allocation17], 64   ;;  %p2788_p3 = pmov %p2782_p0 }
 0x371   : > { %p2789_p9 = pmov %p2782_p0 }
 0x372   : > { %1939 = vsyncadd (%p2788_p3), [#allocation17], 4294967232 }
 0x373   : > { %1941 = dma.done.wait (%p2789_p9), [#allocation20], 32   ;;  %p2790_p4 = pmov %p2782_p0 }
 0x375   : > { %1943 = vsyncadd (%p2790_p4), [#allocation20], 4294967264 }
 0x376 PF: > { %s2791_s26 = sld [smem:[#allocation29_spill]]  ;;  %p1538_p13 = scmp.ge.s32.totalorder %s1978_s1, 2 }
 0x377   : > { %s2792_s22 = sld [smem:[#allocation32_spill]] }
 0x37c   : > { %s1289_s10 = sand.u32 1, %s2791_s26  }
 0x37d   : > { %p2793_p12 = scmp.ne.s32.totalorder %s2792_s22, 0  ;;  %s1290_s4 = scalar_lea.sflag [#allocation8], %s1289_s10 }
 0x37f   : > { %p1521_p6 = pnand %p1538_p13, %p2793_p12 }
 0x381   : > { %p1522_p5 = pneg %p1521_p6 }
 0x383   : > { %1945 = dma.done.wait (%p1522_p5), %s1290_s4, 32  }
 0x384   : > { %1947 = vsyncadd (%p1522_p5), %s1290_s4, 4294967264  ;;  %s2794_s27 = sadd.s32 4294967294, %s1978_s1   ;;  %p2795_p11 = scmp.ne.s32.totalorder %s2756_s17, 0 }
 0x385   : > { %s1299_s30 = sand.u32 1, %s2794_s27  }
 0x386   : > { %p1524_p8 = pnand %p1538_p13, %p2795_p11  ;;  %s1300_s2 = scalar_lea.sflag [#allocation14], %s1299_s30 }
 0x388   : > { %p1525_p0 = pneg %p1524_p8 }
 0x38a   : > { %1949 = dma.done.wait (%p1525_p0), %s1300_s2, 32  }
 0x38b   : > { %1951 = vsyncadd (%p1525_p0), %s1300_s2, 4294967264  ;;  %s2796_s1 = sld [smem:[#allocation33_spill]]  ;;  %s2800_s27 = smov %s1958_s28 }
 0x38c   : > { %s2797_s21 = sld [smem:[#allocation35_spill]]  ;;  %s2801_s28 = smov %s1962_s29 }
 0x38d   : > { %s2798_s15 = sld [smem:[#allocation30_spill]]  ;;  %s2803_s30 = smov %s1970_s0 }
 0x38e   : > { %s2799_s19 = sld [smem:[#allocation34_spill]] }
 0x391   : > { %p40_p10 = scmp.ge.s32.totalorder %s2796_s1, 10  }
 0x392   : > { %s2802_s29 = smov %s2797_s21 }
 0x393   : > { %s2804_s0 = smov %s2798_s15  ;;  %42 = sbr.rel (!%p40_p10) target bundleno = 30 (0x1e), region = 191 }
 0x398   :  { %1306 = vsyncpa [#allocation7], 1 }
 0x399   :  { %1308 = vsyncpa [#allocation7 + $0x1], 1 }
 0x39a   :  { %1309 = vsyncpa [#allocation10], 1 }
 0x39b   :  { %1311 = vsyncpa [#allocation10 + $0x1], 1 }
 0x39c   :  { %1312 = vsyncpa [#allocation8], 1 }
 0x39d   :  { %1314 = vsyncpa [#allocation8 + $0x1], 1 }
 0x39e   :  { %1315 = vsyncpa [#allocation14], 1 }
 0x39f   :  { %1317 = vsyncpa [#allocation14 + $0x1], 1 }
 0x3a0   :  { %1318 = vsyncpa [#allocation17], 1 }
 0x3a1   :  { %1319 = vsyncpa [#allocation20], 1 }

</bundles_post_ra>
